<compile_context>
chip_gen: v6e
topology: v6e:2x2x1
jax: 0.10.0
libtpu: 0.0.40
codegen_flags: <defaults>
</compile_context>

<pallas_src>
import math
import functools

import numpy as np
import jax
import jax.numpy as jnp
from jax.experimental import pallas as pl
from jax.experimental.pallas import tpu as pltpu


# ----------------------------- Pallas kernel ------------------------------ #
def _tri_attn_kernel(x_ref, bias_ref, wq_ref, wkv_ref, wg_ref, wo_ref, o_ref,
                     q_scr, m_scr, l_scr, acc_scr,
                     *, n_head, d_hidden, block_k):
    # x_ref    : (L, d_pair)      bf16   LayerNormed pair row i of batch b
    # bias_ref : (H, L, block_k)  bf16   triangle bias [h, j, k-tile]
    # wq_ref   : (d_pair, H*D)    bf16   (1/sqrt(D) already folded in)
    # wkv_ref  : (d_pair, 2*H*D)  bf16   [Wk | Wv]
    # wg_ref   : (d_pair, H)      bf16
    # wo_ref   : (H*D, d_pair)    bf16
    # o_ref    : (L, d_pair)
    # q_scr    : (L, H*D) bf16 ; m_scr/l_scr : (L, H) f32 ; acc_scr : (L, H*D) f32
    H, D = n_head, d_hidden
    HD = H * D
    kt = pl.program_id(2)
    n_kt = pl.num_programs(2)

    @pl.when(kt == 0)
    def _init():
        # q projection for all j of row i (scaling folded into wq).
        q_scr[...] = jnp.dot(x_ref[...], wq_ref[...],
                             preferred_element_type=jnp.float32
                             ).astype(q_scr.dtype)
        m_scr[...] = jnp.full(m_scr.shape, -jnp.inf, dtype=m_scr.dtype)
        l_scr[...] = jnp.zeros(l_scr.shape, dtype=l_scr.dtype)
        acc_scr[...] = jnp.zeros(acc_scr.shape, dtype=acc_scr.dtype)

    # k / v projections for this k-tile (rows kt*block_k .. of the same pair row).
    k_start = pl.multiple_of(kt * block_k, block_k)
    xk = x_ref[pl.ds(k_start, block_k), :]                       # (bk, d_pair) bf16
    kv = jnp.dot(xk, wkv_ref[...],
                 preferred_element_type=jnp.float32)             # (bk, 2*HD) f32
    kv = kv.astype(jnp.bfloat16)
    k_t = kv[:, :HD]                                             # (bk, HD) bf16
    v_t = kv[:, HD:]                                             # (bk, HD) bf16

    q = q_scr[...]                                               # (L, HD)  bf16
    bias = bias_ref[...].astype(jnp.float32)                     # (H, L, bk)

    # Online softmax over the k-tile, per head (heads only split at the matmul;
    # state m/l/acc kept in flat lane-dense (L, H)/(L, H*D) layouts).
    for h in range(H):
        qh = q[:, h * D:(h + 1) * D]                             # (L, D)
        kh = k_t[:, h * D:(h + 1) * D]                           # (bk, D)
        vh = v_t[:, h * D:(h + 1) * D]                           # (bk, D)

        s = jax.lax.dot_general(qh, kh, (((1,), (1,)), ((), ())),
                                preferred_element_type=jnp.float32)  # (L, bk)
        s = s + bias[h]

        m_prev = m_scr[:, h:h + 1]                               # (L, 1)
        m_new = jnp.maximum(m_prev, jnp.max(s, axis=-1, keepdims=True))
        alpha = jnp.exp(m_prev - m_new)                          # (L, 1)
        p = jnp.exp(s - m_new)                                   # (L, bk)

        l_scr[:, h:h + 1] = alpha * l_scr[:, h:h + 1] + jnp.sum(
            p, axis=-1, keepdims=True)
        m_scr[:, h:h + 1] = m_new
        acc_scr[:, h * D:(h + 1) * D] = (
            alpha * acc_scr[:, h * D:(h + 1) * D]
            + jnp.dot(p.astype(jnp.bfloat16), vh,
                      preferred_element_type=jnp.float32))

    @pl.when(kt == n_kt - 1)
    def _finalize():
        # sigmoid gating (gate projection fused in-kernel) + softmax denom.
        gate = jnp.dot(x_ref[...], wg_ref[...],
                       preferred_element_type=jnp.float32)       # (L, H)
        g = jax.nn.sigmoid(gate)
        inv_l = pl.reciprocal(l_scr[...], approx=True)           # (L, H)
        scale = g * inv_l                                        # (L, H)
        for h in range(H):
            acc_scr[:, h * D:(h + 1) * D] = (
                acc_scr[:, h * D:(h + 1) * D] * scale[:, h:h + 1])
        out_bf = acc_scr[...].astype(jnp.bfloat16)               # (L, HD)
        # single lane-dense output projection: (L, HD) @ (HD, d_pair)
        o_ref[...] = jnp.dot(out_bf, wo_ref[...],
                             preferred_element_type=jnp.float32
                             ).astype(o_ref.dtype)


# ------------------------------- wrapper ----------------------------------- #
def triangle_attention(pair, params, *, n_head, d_hidden, starting=True,
                       block_k=256):
    """Forward pass of TriangleAttention (starting=True, no mask)."""
    if not starting:
        raise NotImplementedError("only the default starting=True path is implemented")
    # TODO(synk): mask_2d path (masked_fill with -inf over k) not implemented;
    # this mirrors the mask_2d=None default call.

    B, L, _, d_pair = pair.shape
    H, D = n_head, d_hidden
    HD = H * D
    scaling = 1.0 / math.sqrt(d_hidden)

    bk = min(block_k, L)
    if L % bk != 0:
        raise ValueError(f"L={L} must be divisible by block_k={bk}")
    n_kt = L // bk

    # ---- glue: LayerNorm (plain JAX) ----
    mu = jnp.mean(pair, axis=-1, keepdims=True)
    var = jnp.mean((pair - mu) ** 2, axis=-1, keepdims=True)
    x = (pair - mu) / jnp.sqrt(var + 1e-5) * params["ln_g"] + params["ln_b"]
    x_bf = x.astype(jnp.bfloat16)

    # Thin triangle bias (H channels), heads-leading, bf16 for streaming.
    bias_t = jnp.einsum("bjkc,ch->bhjk", x, params["Wb"]).astype(jnp.bfloat16)

    # Weight prep: fold 1/sqrt(D) into Wq, pack [Wk | Wv], bf16 for the MXU.
    wq = (params["Wq"] * scaling).astype(jnp.bfloat16)
    wkv = jnp.concatenate([params["Wk"], params["Wv"]], axis=1).astype(jnp.bfloat16)
    wg = params["Wg"].astype(jnp.bfloat16)
    wo = params["Wo"].astype(jnp.bfloat16)

    kernel = functools.partial(_tri_attn_kernel, n_head=H, d_hidden=D, block_k=bk)

    out = pl.pallas_call(
        kernel,
        out_shape=jax.ShapeDtypeStruct((B, L, L, d_pair), pair.dtype),
        grid=(B, L, n_kt),
        in_specs=[
            # LayerNormed pair row i (resident across the k-tile axis).
            pl.BlockSpec((None, None, L, d_pair), lambda b, i, kt: (b, i, 0, 0)),
            # triangle bias, streamed per k-tile.
            pl.BlockSpec((None, H, L, bk), lambda b, i, kt: (b, 0, 0, kt)),
            pl.BlockSpec((d_pair, HD), lambda b, i, kt: (0, 0)),       # Wq*scale
            pl.BlockSpec((d_pair, 2 * HD), lambda b, i, kt: (0, 0)),   # [Wk|Wv]
            pl.BlockSpec((d_pair, H), lambda b, i, kt: (0, 0)),        # Wg
            pl.BlockSpec((HD, d_pair), lambda b, i, kt: (0, 0)),       # Wo
        ],
        out_specs=pl.BlockSpec((None, None, L, d_pair), lambda b, i, kt: (b, i, 0, 0)),
        scratch_shapes=[
            pltpu.VMEM((L, HD), jnp.bfloat16),   # q for row i
            pltpu.VMEM((L, H), jnp.float32),     # running max  m
            pltpu.VMEM((L, H), jnp.float32),     # running sum  l
            pltpu.VMEM((L, HD), jnp.float32),    # output accumulator
        ],
        compiler_params=pltpu.CompilerParams(
            dimension_semantics=("parallel", "parallel", "arbitrary"),
            vmem_limit_bytes=32 * 1024 * 1024),
    )(x_bf, bias_t, wq, wkv, wg, wo)
    return out


# --------------------------- pure-JAX reference ----------------------------- #
def triangle_attention_ref(pair, params, *, n_head, d_hidden):
    B, L, _, d_pair = pair.shape
    H, D = n_head, d_hidden
    scaling = 1.0 / math.sqrt(d_hidden)

    mu = jnp.mean(pair, axis=-1, keepdims=True)
    var = jnp.mean((pair - mu) ** 2, axis=-1, keepdims=True)
    x = (pair - mu) / jnp.sqrt(var + 1e-5) * params["ln_g"] + params["ln_b"]

    q = (x @ params["Wq"]).reshape(B, L, L, H, D) * scaling
    k = (x @ params["Wk"]).reshape(B, L, L, H, D)
    v = (x @ params["Wv"]).reshape(B, L, L, H, D)
    bias = x @ params["Wb"]
    gate = x @ params["Wg"]

    attn = jnp.einsum("bijhd,bikhd->bijkh", q, k) + bias[:, None]
    attn = jax.nn.softmax(attn, axis=-2)
    out = jnp.einsum("bijkh,bikhd->bijhd", attn, v)
    out = jax.nn.sigmoid(gate)[..., None] * out
    out = out.reshape(B, L, L, H * D)
    return out @ params["Wo"]


# ---------------------------------- main ------------------------------------ #
if __name__ == "__main__":
    def make_params(key, d_pair, n_head, d_hidden):
        # Deterministic synthetic parameters (shapes from TriangleAttention.__init__).
        # Note: 'gating'/'final' inits would zero Wg/Wo; we use small random values
        # so the kernel produces a non-trivial output (synthetic weights, no ckpt).
        HD = n_head * d_hidden
        ks = jax.random.split(key, 6)
        return {
            "ln_g": jnp.ones((d_pair,), jnp.float32),
            "ln_b": jnp.zeros((d_pair,), jnp.float32),
            "Wq": 0.05 * jax.random.normal(ks[0], (d_pair, HD), jnp.float32),
            "Wk": 0.05 * jax.random.normal(ks[1], (d_pair, HD), jnp.float32),
            "Wv": 0.05 * jax.random.normal(ks[2], (d_pair, HD), jnp.float32),
            "Wb": 0.05 * jax.random.normal(ks[3], (d_pair, n_head), jnp.float32),
            "Wg": 0.05 * jax.random.normal(ks[4], (d_pair, n_head), jnp.float32),
            "Wo": 0.05 * jax.random.normal(ks[5], (HD, d_pair), jnp.float32),
        }

    key = jax.random.PRNGKey(0)
    k1, k2, k3, k4 = jax.random.split(key, 4)

    d_pair, d_hidden, n_head = 32, 16, 4

    # --- small shape (single k tile) ---
    B, L = 2, 8
    params = make_params(k1, d_pair, n_head, d_hidden)
    pair = jax.random.normal(k2, (B, L, L, d_pair), jnp.float32)
    out = jax.block_until_ready(
        triangle_attention(pair, params, n_head=n_head, d_hidden=d_hidden))
    ref = triangle_attention_ref(pair, params, n_head=n_head, d_hidden=d_hidden)
    np.testing.assert_allclose(np.asarray(out), np.asarray(ref),
                               rtol=1e-2, atol=1e-2)

    # --- larger shape exercising the online-softmax k tiling (2 k tiles) ---
    B2, L2 = 1, 256
    params2 = make_params(k3, d_pair, n_head, d_hidden)
    pair2 = jax.random.normal(k4, (B2, L2, L2, d_pair), jnp.float32)
    out2 = jax.block_until_ready(
        triangle_attention(pair2, params2, n_head=n_head, d_hidden=d_hidden,
                           block_k=128))
    ref2 = triangle_attention_ref(pair2, params2, n_head=n_head, d_hidden=d_hidden)
    np.testing.assert_allclose(np.asarray(out2), np.asarray(ref2),
                               rtol=1e-2, atol=1e-2)

    print("KERNEL_OK")
</pallas_src>

<mosaic_0001>
module attributes {stable_mosaic.version = 11 : i64} {
  func.func @_tri_attn_kernel(%arg0: i32, %arg1: i32, %arg2: i32, %arg3: memref<1x1x8x32xbf16, #tpu.memory_space<vmem>>, %arg4: memref<1x4x8x8xbf16, #tpu.memory_space<vmem>>, %arg5: memref<32x64xbf16, #tpu.memory_space<vmem>>, %arg6: memref<32x128xbf16, #tpu.memory_space<vmem>>, %arg7: memref<32x4xbf16, #tpu.memory_space<vmem>>, %arg8: memref<64x32xbf16, #tpu.memory_space<vmem>>, %arg9: memref<1x1x8x32xf32, #tpu.memory_space<vmem>>, %arg10: memref<8x64xbf16, #tpu.memory_space<vmem>>, %arg11: memref<8x4xf32, #tpu.memory_space<vmem>>, %arg12: memref<8x4xf32, #tpu.memory_space<vmem>>, %arg13: memref<8x64xf32, #tpu.memory_space<vmem>>) attributes {dimension_semantics = [#tpu.dimension_semantics<parallel>, #tpu.dimension_semantics<parallel>, #tpu.dimension_semantics<arbitrary>], iteration_bounds = array<i64: 2, 8, 1>, scalar_prefetch = 0 : i64, scratch_operands = 4 : i64, tpu.core_type = #tpu.core_type<tc>, window_params = [{transform_indices = @transform_0, window_bounds = array<i64: 1, 1, 8, 32>}, {transform_indices = @transform_1, window_bounds = array<i64: 1, 4, 8, 8>}, {pipeline_mode = #tpu.pipeline_mode<synchronous>, transform_indices = @transform_2, window_bounds = array<i64: 32, 64>}, {pipeline_mode = #tpu.pipeline_mode<synchronous>, transform_indices = @transform_3, window_bounds = array<i64: 32, 128>}, {pipeline_mode = #tpu.pipeline_mode<synchronous>, transform_indices = @transform_4, window_bounds = array<i64: 32, 4>}, {pipeline_mode = #tpu.pipeline_mode<synchronous>, transform_indices = @transform_5, window_bounds = array<i64: 64, 32>}, {transform_indices = @transform_6, window_bounds = array<i64: 1, 1, 8, 32>}]} {
    %c0_i32 = arith.constant 0 : i32
    %0 = arith.cmpi eq, %arg2, %c0_i32 : i32
    %1 = arith.extui %0 : i1 to i32
    %c0_i32_0 = arith.constant 0 : i32
    %2 = arith.cmpi ne, %1, %c0_i32_0 : i32
    scf.if %2 {
      %c0_71 = arith.constant 0 : index
      %c0_72 = arith.constant 0 : index
      %c0_73 = arith.constant 0 : index
      %c0_74 = arith.constant 0 : index
      %140 = vector.load %arg3[%c0_71, %c0_72, %c0_73, %c0_74] : memref<1x1x8x32xbf16, #tpu.memory_space<vmem>>, vector<1x1x8x32xbf16>
      %141 = vector.shape_cast %140 : vector<1x1x8x32xbf16> to vector<8x32xbf16>
      %c0_75 = arith.constant 0 : index
      %c0_76 = arith.constant 0 : index
      %142 = vector.load %arg5[%c0_75, %c0_76] : memref<32x64xbf16, #tpu.memory_space<vmem>>, vector<32x64xbf16>
      %cst_77 = arith.constant dense<0.000000e+00> : vector<8x64xf32>
      %143 = tpu.matmul %141, %142, %cst_77 {dimension_numbers = #tpu.dot_dimension_numbers<[1], [0], [0], [1], [0, 0, 1, 1], [], []>} : vector<8x32xbf16>, vector<32x64xbf16>, vector<8x64xf32> -> vector<8x64xf32>
      %144 = arith.truncf %143 : vector<8x64xf32> to vector<8x64xbf16>
      %c0_78 = arith.constant 0 : index
      %c0_79 = arith.constant 0 : index
      %145 = vector.load %arg10[%c0_78, %c0_79] : memref<8x64xbf16, #tpu.memory_space<vmem>>, vector<8x64xbf16>
      tpu.vector_store %arg10[%c0_78, %c0_79], %144 {strides = array<i32>} : memref<8x64xbf16, #tpu.memory_space<vmem>>, vector<8x64xbf16>,
      %cst_80 = arith.constant 0xFF800000 : f32
      %146 = vector.broadcast %cst_80 : f32 to vector<8x4xf32>
      %c0_81 = arith.constant 0 : index
      %c0_82 = arith.constant 0 : index
      %147 = vector.load %arg11[%c0_81, %c0_82] : memref<8x4xf32, #tpu.memory_space<vmem>>, vector<8x4xf32>
      tpu.vector_store %arg11[%c0_81, %c0_82], %146 {strides = array<i32>} : memref<8x4xf32, #tpu.memory_space<vmem>>, vector<8x4xf32>,
      %cst_83 = arith.constant 0.000000e+00 : f32
      %148 = vector.broadcast %cst_83 : f32 to vector<8x4xf32>
      %c0_84 = arith.constant 0 : index
      %c0_85 = arith.constant 0 : index
      %149 = vector.load %arg12[%c0_84, %c0_85] : memref<8x4xf32, #tpu.memory_space<vmem>>, vector<8x4xf32>
      tpu.vector_store %arg12[%c0_84, %c0_85], %148 {strides = array<i32>} : memref<8x4xf32, #tpu.memory_space<vmem>>, vector<8x4xf32>,
      %cst_86 = arith.constant 0.000000e+00 : f32
      %150 = vector.broadcast %cst_86 : f32 to vector<8x64xf32>
      %c0_87 = arith.constant 0 : index
      %c0_88 = arith.constant 0 : index
      %151 = vector.load %arg13[%c0_87, %c0_88] : memref<8x64xf32, #tpu.memory_space<vmem>>, vector<8x64xf32>
      tpu.vector_store %arg13[%c0_87, %c0_88], %150 {strides = array<i32>} : memref<8x64xf32, #tpu.memory_space<vmem>>, vector<8x64xf32>,
    } else {
    }
    %c8_i32 = arith.constant 8 : i32
    %3 = arith.muli %arg2, %c8_i32 : i32
    %4 = tpu.assume_multiple %3, 8 : i32
    %c0 = arith.constant 0 : index
    %c0_1 = arith.constant 0 : index
    %5 = arith.index_cast %4 : i32 to index
    %c0_2 = arith.constant 0 : index
    %6 = vector.load %arg3[%c0, %c0_1, %5, %c0_2] : memref<1x1x8x32xbf16, #tpu.memory_space<vmem>>, vector<1x1x8x32xbf16>
    %7 = vector.shape_cast %6 : vector<1x1x8x32xbf16> to vector<8x32xbf16>
    %c0_3 = arith.constant 0 : index
    %c0_4 = arith.constant 0 : index
    %8 = vector.load %arg6[%c0_3, %c0_4] : memref<32x128xbf16, #tpu.memory_space<vmem>>, vector<32x128xbf16>
    %cst = arith.constant dense<0.000000e+00> : vector<8x128xf32>
    %9 = tpu.matmul %7, %8, %cst {dimension_numbers = #tpu.dot_dimension_numbers<[1], [0], [0], [1], [0, 0, 1, 1], [], []>} : vector<8x32xbf16>, vector<32x128xbf16>, vector<8x128xf32> -> vector<8x128xf32>
    %10 = arith.truncf %9 : vector<8x128xf32> to vector<8x128xbf16>
    %11 = vector.extract_strided_slice %10 {offsets = [0, 0], sizes = [8, 64], strides = [1, 1]} : vector<8x128xbf16> to vector<8x64xbf16>
    %12 = vector.extract_strided_slice %10 {offsets = [0, 64], sizes = [8, 64], strides = [1, 1]} : vector<8x128xbf16> to vector<8x64xbf16>
    %c0_5 = arith.constant 0 : index
    %c0_6 = arith.constant 0 : index
    %13 = vector.load %arg10[%c0_5, %c0_6] : memref<8x64xbf16, #tpu.memory_space<vmem>>, vector<8x64xbf16>
    %c0_7 = arith.constant 0 : index
    %c0_8 = arith.constant 0 : index
    %c0_9 = arith.constant 0 : index
    %c0_10 = arith.constant 0 : index
    %14 = vector.load %arg4[%c0_7, %c0_8, %c0_9, %c0_10] : memref<1x4x8x8xbf16, #tpu.memory_space<vmem>>, vector<1x4x8x8xbf16>
    %15 = vector.shape_cast %14 : vector<1x4x8x8xbf16> to vector<4x8x8xbf16>
    %16 = arith.extf %15 : vector<4x8x8xbf16> to vector<4x8x8xf32>
    %17 = vector.extract_strided_slice %13 {offsets = [0, 0], sizes = [8, 16], strides = [1, 1]} : vector<8x64xbf16> to vector<8x16xbf16>
    %18 = vector.extract_strided_slice %11 {offsets = [0, 0], sizes = [8, 16], strides = [1, 1]} : vector<8x64xbf16> to vector<8x16xbf16>
    %19 = vector.extract_strided_slice %12 {offsets = [0, 0], sizes = [8, 16], strides = [1, 1]} : vector<8x64xbf16> to vector<8x16xbf16>
    %cst_11 = arith.constant dense<0.000000e+00> : vector<8x8xf32>
    %20 = tpu.matmul %17, %18, %cst_11 {dimension_numbers = #tpu.dot_dimension_numbers<[1], [1], [0], [0], [0, 0, 1, 0], [], []>} : vector<8x16xbf16>, vector<8x16xbf16>, vector<8x8xf32> -> vector<8x8xf32>
    %21 = vector.extract_strided_slice %16 {offsets = [0, 0, 0], sizes = [1, 8, 8], strides = [1, 1, 1]} : vector<4x8x8xf32> to vector<1x8x8xf32>
    %22 = vector.shape_cast %21 : vector<1x8x8xf32> to vector<8x8xf32>
    %23 = arith.addf %20, %22 : vector<8x8xf32>
    %c0_12 = arith.constant 0 : index
    %c0_13 = arith.constant 0 : index
    %24 = vector.load %arg11[%c0_12, %c0_13] : memref<8x4xf32, #tpu.memory_space<vmem>>, vector<8x1xf32>
    %cst_14 = arith.constant dense<0xFF800000> : vector<8xf32>
    %25 = vector.multi_reduction <maximumf>, %23, %cst_14 [1] : vector<8x8xf32> to vector<8xf32>
    %26 = vector.shape_cast %25 : vector<8xf32> to vector<8x1xf32>
    %27 = arith.maximumf %24, %26 : vector<8x1xf32>
    %28 = arith.subf %24, %27 : vector<8x1xf32>
    %29 = math.exp %28 : vector<8x1xf32>
    %30 = vector.broadcast %27 : vector<8x1xf32> to vector<8x8xf32>
    %31 = arith.subf %23, %30 : vector<8x8xf32>
    %32 = math.exp %31 : vector<8x8xf32>
    %c0_15 = arith.constant 0 : index
    %c0_16 = arith.constant 0 : index
    %33 = vector.load %arg12[%c0_15, %c0_16] : memref<8x4xf32, #tpu.memory_space<vmem>>, vector<8x1xf32>
    %34 = arith.mulf %29, %33 : vector<8x1xf32>
    %cst_17 = arith.constant dense<0.000000e+00> : vector<8xf32>
    %35 = vector.multi_reduction <add>, %32, %cst_17 [1] : vector<8x8xf32> to vector<8xf32>
    %36 = vector.shape_cast %35 : vector<8xf32> to vector<8x1xf32>
    %37 = arith.addf %34, %36 : vector<8x1xf32>
    %c0_18 = arith.constant 0 : index
    %c0_19 = arith.constant 0 : index
    %38 = vector.load %arg12[%c0_18, %c0_19] : memref<8x4xf32, #tpu.memory_space<vmem>>, vector<8x1xf32>
    tpu.vector_store %arg12[%c0_18, %c0_19], %37 {strides = array<i32>} : memref<8x4xf32, #tpu.memory_space<vmem>>, vector<8x1xf32>,
    %c0_20 = arith.constant 0 : index
    %c0_21 = arith.constant 0 : index
    %39 = vector.load %arg11[%c0_20, %c0_21] : memref<8x4xf32, #tpu.memory_space<vmem>>, vector<8x1xf32>
    tpu.vector_store %arg11[%c0_20, %c0_21], %27 {strides = array<i32>} : memref<8x4xf32, #tpu.memory_space<vmem>>, vector<8x1xf32>,
    %c0_22 = arith.constant 0 : index
    %c0_23 = arith.constant 0 : index
    %40 = vector.load %arg13[%c0_22, %c0_23] : memref<8x64xf32, #tpu.memory_space<vmem>>, vector<8x16xf32>
    %41 = vector.broadcast %29 : vector<8x1xf32> to vector<8x16xf32>
    %42 = arith.mulf %41, %40 : vector<8x16xf32>
    %43 = arith.truncf %32 : vector<8x8xf32> to vector<8x8xbf16>
    %cst_24 = arith.constant dense<0.000000e+00> : vector<8x16xf32>
    %44 = tpu.matmul %43, %19, %cst_24 {dimension_numbers = #tpu.dot_dimension_numbers<[1], [0], [0], [1], [0, 0, 1, 1], [], []>} : vector<8x8xbf16>, vector<8x16xbf16>, vector<8x16xf32> -> vector<8x16xf32>
    %45 = arith.addf %42, %44 : vector<8x16xf32>
    %c0_25 = arith.constant 0 : index
    %c0_26 = arith.constant 0 : index
    %46 = vector.load %arg13[%c0_25, %c0_26] : memref<8x64xf32, #tpu.memory_space<vmem>>, vector<8x16xf32>
    tpu.vector_store %arg13[%c0_25, %c0_26], %45 {strides = array<i32>} : memref<8x64xf32, #tpu.memory_space<vmem>>, vector<8x16xf32>,
    %47 = vector.extract_strided_slice %13 {offsets = [0, 16], sizes = [8, 16], strides = [1, 1]} : vector<8x64xbf16> to vector<8x16xbf16>
    %48 = vector.extract_strided_slice %11 {offsets = [0, 16], sizes = [8, 16], strides = [1, 1]} : vector<8x64xbf16> to vector<8x16xbf16>
    %49 = vector.extract_strided_slice %12 {offsets = [0, 16], sizes = [8, 16], strides = [1, 1]} : vector<8x64xbf16> to vector<8x16xbf16>
    %cst_27 = arith.constant dense<0.000000e+00> : vector<8x8xf32>
    %50 = tpu.matmul %47, %48, %cst_27 {dimension_numbers = #tpu.dot_dimension_numbers<[1], [1], [0], [0], [0, 0, 1, 0], [], []>} : vector<8x16xbf16>, vector<8x16xbf16>, vector<8x8xf32> -> vector<8x8xf32>
    %51 = vector.extract_strided_slice %16 {offsets = [1, 0, 0], sizes = [1, 8, 8], strides = [1, 1, 1]} : vector<4x8x8xf32> to vector<1x8x8xf32>
    %52 = vector.shape_cast %51 : vector<1x8x8xf32> to vector<8x8xf32>
    %53 = arith.addf %50, %52 : vector<8x8xf32>
    %c0_28 = arith.constant 0 : index
    %c1 = arith.constant 1 : index
    %54 = vector.load %arg11[%c0_28, %c1] : memref<8x4xf32, #tpu.memory_space<vmem>>, vector<8x1xf32>
    %cst_29 = arith.constant dense<0xFF800000> : vector<8xf32>
    %55 = vector.multi_reduction <maximumf>, %53, %cst_29 [1] : vector<8x8xf32> to vector<8xf32>
    %56 = vector.shape_cast %55 : vector<8xf32> to vector<8x1xf32>
    %57 = arith.maximumf %54, %56 : vector<8x1xf32>
    %58 = arith.subf %54, %57 : vector<8x1xf32>
    %59 = math.exp %58 : vector<8x1xf32>
    %60 = vector.broadcast %57 : vector<8x1xf32> to vector<8x8xf32>
    %61 = arith.subf %53, %60 : vector<8x8xf32>
    %62 = math.exp %61 : vector<8x8xf32>
    %c0_30 = arith.constant 0 : index
    %c1_31 = arith.constant 1 : index
    %63 = vector.load %arg12[%c0_30, %c1_31] : memref<8x4xf32, #tpu.memory_space<vmem>>, vector<8x1xf32>
    %64 = arith.mulf %59, %63 : vector<8x1xf32>
    %cst_32 = arith.constant dense<0.000000e+00> : vector<8xf32>
    %65 = vector.multi_reduction <add>, %62, %cst_32 [1] : vector<8x8xf32> to vector<8xf32>
    %66 = vector.shape_cast %65 : vector<8xf32> to vector<8x1xf32>
    %67 = arith.addf %64, %66 : vector<8x1xf32>
    %c0_33 = arith.constant 0 : index
    %c1_34 = arith.constant 1 : index
    %68 = vector.load %arg12[%c0_33, %c1_34] : memref<8x4xf32, #tpu.memory_space<vmem>>, vector<8x1xf32>
    tpu.vector_store %arg12[%c0_33, %c1_34], %67 {strides = array<i32>} : memref<8x4xf32, #tpu.memory_space<vmem>>, vector<8x1xf32>,
    %c0_35 = arith.constant 0 : index
    %c1_36 = arith.constant 1 : index
    %69 = vector.load %arg11[%c0_35, %c1_36] : memref<8x4xf32, #tpu.memory_space<vmem>>, vector<8x1xf32>
    tpu.vector_store %arg11[%c0_35, %c1_36], %57 {strides = array<i32>} : memref<8x4xf32, #tpu.memory_space<vmem>>, vector<8x1xf32>,
    %c0_37 = arith.constant 0 : index
    %c16 = arith.constant 16 : index
    %70 = vector.load %arg13[%c0_37, %c16] : memref<8x64xf32, #tpu.memory_space<vmem>>, vector<8x16xf32>
    %71 = vector.broadcast %59 : vector<8x1xf32> to vector<8x16xf32>
    %72 = arith.mulf %71, %70 : vector<8x16xf32>
    %73 = arith.truncf %62 : vector<8x8xf32> to vector<8x8xbf16>
    %cst_38 = arith.constant dense<0.000000e+00> : vector<8x16xf32>
    %74 = tpu.matmul %73, %49, %cst_38 {dimension_numbers = #tpu.dot_dimension_numbers<[1], [0], [0], [1], [0, 0, 1, 1], [], []>} : vector<8x8xbf16>, vector<8x16xbf16>, vector<8x16xf32> -> vector<8x16xf32>
    %75 = arith.addf %72, %74 : vector<8x16xf32>
    %c0_39 = arith.constant 0 : index
    %c16_40 = arith.constant 16 : index
    %76 = vector.load %arg13[%c0_39, %c16_40] : memref<8x64xf32, #tpu.memory_space<vmem>>, vector<8x16xf32>
    tpu.vector_store %arg13[%c0_39, %c16_40], %75 {strides = array<i32>} : memref<8x64xf32, #tpu.memory_space<vmem>>, vector<8x16xf32>,
    %77 = vector.extract_strided_slice %13 {offsets = [0, 32], sizes = [8, 16], strides = [1, 1]} : vector<8x64xbf16> to vector<8x16xbf16>
    %78 = vector.extract_strided_slice %11 {offsets = [0, 32], sizes = [8, 16], strides = [1, 1]} : vector<8x64xbf16> to vector<8x16xbf16>
    %79 = vector.extract_strided_slice %12 {offsets = [0, 32], sizes = [8, 16], strides = [1, 1]} : vector<8x64xbf16> to vector<8x16xbf16>
    %cst_41 = arith.constant dense<0.000000e+00> : vector<8x8xf32>
    %80 = tpu.matmul %77, %78, %cst_41 {dimension_numbers = #tpu.dot_dimension_numbers<[1], [1], [0], [0], [0, 0, 1, 0], [], []>} : vector<8x16xbf16>, vector<8x16xbf16>, vector<8x8xf32> -> vector<8x8xf32>
    %81 = vector.extract_strided_slice %16 {offsets = [2, 0, 0], sizes = [1, 8, 8], strides = [1, 1, 1]} : vector<4x8x8xf32> to vector<1x8x8xf32>
    %82 = vector.shape_cast %81 : vector<1x8x8xf32> to vector<8x8xf32>
    %83 = arith.addf %80, %82 : vector<8x8xf32>
    %c0_42 = arith.constant 0 : index
    %c2 = arith.constant 2 : index
    %84 = vector.load %arg11[%c0_42, %c2] : memref<8x4xf32, #tpu.memory_space<vmem>>, vector<8x1xf32>
    %cst_43 = arith.constant dense<0xFF800000> : vector<8xf32>
    %85 = vector.multi_reduction <maximumf>, %83, %cst_43 [1] : vector<8x8xf32> to vector<8xf32>
    %86 = vector.shape_cast %85 : vector<8xf32> to vector<8x1xf32>
    %87 = arith.maximumf %84, %86 : vector<8x1xf32>
    %88 = arith.subf %84, %87 : vector<8x1xf32>
    %89 = math.exp %88 : vector<8x1xf32>
    %90 = vector.broadcast %87 : vector<8x1xf32> to vector<8x8xf32>
    %91 = arith.subf %83, %90 : vector<8x8xf32>
    %92 = math.exp %91 : vector<8x8xf32>
    %c0_44 = arith.constant 0 : index
    %c2_45 = arith.constant 2 : index
    %93 = vector.load %arg12[%c0_44, %c2_45] : memref<8x4xf32, #tpu.memory_space<vmem>>, vector<8x1xf32>
    %94 = arith.mulf %89, %93 : vector<8x1xf32>
    %cst_46 = arith.constant dense<0.000000e+00> : vector<8xf32>
    %95 = vector.multi_reduction <add>, %92, %cst_46 [1] : vector<8x8xf32> to vector<8xf32>
    %96 = vector.shape_cast %95 : vector<8xf32> to vector<8x1xf32>
    %97 = arith.addf %94, %96 : vector<8x1xf32>
    %c0_47 = arith.constant 0 : index
    %c2_48 = arith.constant 2 : index
    %98 = vector.load %arg12[%c0_47, %c2_48] : memref<8x4xf32, #tpu.memory_space<vmem>>, vector<8x1xf32>
    tpu.vector_store %arg12[%c0_47, %c2_48], %97 {strides = array<i32>} : memref<8x4xf32, #tpu.memory_space<vmem>>, vector<8x1xf32>,
    %c0_49 = arith.constant 0 : index
    %c2_50 = arith.constant 2 : index
    %99 = vector.load %arg11[%c0_49, %c2_50] : memref<8x4xf32, #tpu.memory_space<vmem>>, vector<8x1xf32>
    tpu.vector_store %arg11[%c0_49, %c2_50], %87 {strides = array<i32>} : memref<8x4xf32, #tpu.memory_space<vmem>>, vector<8x1xf32>,
    %c0_51 = arith.constant 0 : index
    %c32 = arith.constant 32 : index
    %100 = vector.load %arg13[%c0_51, %c32] : memref<8x64xf32, #tpu.memory_space<vmem>>, vector<8x16xf32>
    %101 = vector.broadcast %89 : vector<8x1xf32> to vector<8x16xf32>
    %102 = arith.mulf %101, %100 : vector<8x16xf32>
    %103 = arith.truncf %92 : vector<8x8xf32> to vector<8x8xbf16>
    %cst_52 = arith.constant dense<0.000000e+00> : vector<8x16xf32>
    %104 = tpu.matmul %103, %79, %cst_52 {dimension_numbers = #tpu.dot_dimension_numbers<[1], [0], [0], [1], [0, 0, 1, 1], [], []>} : vector<8x8xbf16>, vector<8x16xbf16>, vector<8x16xf32> -> vector<8x16xf32>
    %105 = arith.addf %102, %104 : vector<8x16xf32>
    %c0_53 = arith.constant 0 : index
    %c32_54 = arith.constant 32 : index
    %106 = vector.load %arg13[%c0_53, %c32_54] : memref<8x64xf32, #tpu.memory_space<vmem>>, vector<8x16xf32>
    tpu.vector_store %arg13[%c0_53, %c32_54], %105 {strides = array<i32>} : memref<8x64xf32, #tpu.memory_space<vmem>>, vector<8x16xf32>,
    %107 = vector.extract_strided_slice %13 {offsets = [0, 48], sizes = [8, 16], strides = [1, 1]} : vector<8x64xbf16> to vector<8x16xbf16>
    %108 = vector.extract_strided_slice %11 {offsets = [0, 48], sizes = [8, 16], strides = [1, 1]} : vector<8x64xbf16> to vector<8x16xbf16>
    %109 = vector.extract_strided_slice %12 {offsets = [0, 48], sizes = [8, 16], strides = [1, 1]} : vector<8x64xbf16> to vector<8x16xbf16>
    %cst_55 = arith.constant dense<0.000000e+00> : vector<8x8xf32>
    %110 = tpu.matmul %107, %108, %cst_55 {dimension_numbers = #tpu.dot_dimension_numbers<[1], [1], [0], [0], [0, 0, 1, 0], [], []>} : vector<8x16xbf16>, vector<8x16xbf16>, vector<8x8xf32> -> vector<8x8xf32>
    %111 = vector.extract_strided_slice %16 {offsets = [3, 0, 0], sizes = [1, 8, 8], strides = [1, 1, 1]} : vector<4x8x8xf32> to vector<1x8x8xf32>
    %112 = vector.shape_cast %111 : vector<1x8x8xf32> to vector<8x8xf32>
    %113 = arith.addf %110, %112 : vector<8x8xf32>
    %c0_56 = arith.constant 0 : index
    %c3 = arith.constant 3 : index
    %114 = vector.load %arg11[%c0_56, %c3] : memref<8x4xf32, #tpu.memory_space<vmem>>, vector<8x1xf32>
    %cst_57 = arith.constant dense<0xFF800000> : vector<8xf32>
    %115 = vector.multi_reduction <maximumf>, %113, %cst_57 [1] : vector<8x8xf32> to vector<8xf32>
    %116 = vector.shape_cast %115 : vector<8xf32> to vector<8x1xf32>
    %117 = arith.maximumf %114, %116 : vector<8x1xf32>
    %118 = arith.subf %114, %117 : vector<8x1xf32>
    %119 = math.exp %118 : vector<8x1xf32>
    %120 = vector.broadcast %117 : vector<8x1xf32> to vector<8x8xf32>
    %121 = arith.subf %113, %120 : vector<8x8xf32>
    %122 = math.exp %121 : vector<8x8xf32>
    %c0_58 = arith.constant 0 : index
    %c3_59 = arith.constant 3 : index
    %123 = vector.load %arg12[%c0_58, %c3_59] : memref<8x4xf32, #tpu.memory_space<vmem>>, vector<8x1xf32>
    %124 = arith.mulf %119, %123 : vector<8x1xf32>
    %cst_60 = arith.constant dense<0.000000e+00> : vector<8xf32>
    %125 = vector.multi_reduction <add>, %122, %cst_60 [1] : vector<8x8xf32> to vector<8xf32>
    %126 = vector.shape_cast %125 : vector<8xf32> to vector<8x1xf32>
    %127 = arith.addf %124, %126 : vector<8x1xf32>
    %c0_61 = arith.constant 0 : index
    %c3_62 = arith.constant 3 : index
    %128 = vector.load %arg12[%c0_61, %c3_62] : memref<8x4xf32, #tpu.memory_space<vmem>>, vector<8x1xf32>
    tpu.vector_store %arg12[%c0_61, %c3_62], %127 {strides = array<i32>} : memref<8x4xf32, #tpu.memory_space<vmem>>, vector<8x1xf32>,
    %c0_63 = arith.constant 0 : index
    %c3_64 = arith.constant 3 : index
    %129 = vector.load %arg11[%c0_63, %c3_64] : memref<8x4xf32, #tpu.memory_space<vmem>>, vector<8x1xf32>
    tpu.vector_store %arg11[%c0_63, %c3_64], %117 {strides = array<i32>} : memref<8x4xf32, #tpu.memory_space<vmem>>, vector<8x1xf32>,
    %c0_65 = arith.constant 0 : index
    %c48 = arith.constant 48 : index
    %130 = vector.load %arg13[%c0_65, %c48] : memref<8x64xf32, #tpu.memory_space<vmem>>, vector<8x16xf32>
    %131 = vector.broadcast %119 : vector<8x1xf32> to vector<8x16xf32>
    %132 = arith.mulf %131, %130 : vector<8x16xf32>
    %133 = arith.truncf %122 : vector<8x8xf32> to vector<8x8xbf16>
    %cst_66 = arith.constant dense<0.000000e+00> : vector<8x16xf32>
    %134 = tpu.matmul %133, %109, %cst_66 {dimension_numbers = #tpu.dot_dimension_numbers<[1], [0], [0], [1], [0, 0, 1, 1], [], []>} : vector<8x8xbf16>, vector<8x16xbf16>, vector<8x16xf32> -> vector<8x16xf32>
    %135 = arith.addf %132, %134 : vector<8x16xf32>
    %c0_67 = arith.constant 0 : index
    %c48_68 = arith.constant 48 : index
    %136 = vector.load %arg13[%c0_67, %c48_68] : memref<8x64xf32, #tpu.memory_space<vmem>>, vector<8x16xf32>
    tpu.vector_store %arg13[%c0_67, %c48_68], %135 {strides = array<i32>} : memref<8x64xf32, #tpu.memory_space<vmem>>, vector<8x16xf32>,
    %c0_i32_69 = arith.constant 0 : i32
    %137 = arith.cmpi eq, %arg2, %c0_i32_69 : i32
    %138 = arith.extui %137 : i1 to i32
    %c0_i32_70 = arith.constant 0 : i32
    %139 = arith.cmpi ne, %138, %c0_i32_70 : i32
    scf.if %139 {
      %c0_71 = arith.constant 0 : index
      %c0_72 = arith.constant 0 : index
      %c0_73 = arith.constant 0 : index
      %c0_74 = arith.constant 0 : index
      %140 = vector.load %arg3[%c0_71, %c0_72, %c0_73, %c0_74] : memref<1x1x8x32xbf16, #tpu.memory_space<vmem>>, vector<1x1x8x32xbf16>
      %141 = vector.shape_cast %140 : vector<1x1x8x32xbf16> to vector<8x32xbf16>
      %c0_75 = arith.constant 0 : index
      %c0_76 = arith.constant 0 : index
      %142 = vector.load %arg7[%c0_75, %c0_76] : memref<32x4xbf16, #tpu.memory_space<vmem>>, vector<32x4xbf16>
      %cst_77 = arith.constant dense<0.000000e+00> : vector<8x4xf32>
      %143 = tpu.matmul %141, %142, %cst_77 {dimension_numbers = #tpu.dot_dimension_numbers<[1], [0], [0], [1], [0, 0, 1, 1], [], []>} : vector<8x32xbf16>, vector<32x4xbf16>, vector<8x4xf32> -> vector<8x4xf32>
      %144 = arith.negf %143 : vector<8x4xf32>
      %145 = math.exp %144 : vector<8x4xf32>
      %cst_78 = arith.constant 1.000000e+00 : f32
      %146 = vector.broadcast %cst_78 : f32 to vector<8x4xf32>
      %147 = arith.addf %146, %145 : vector<8x4xf32>
      %148 = arith.divf %146, %147 : vector<8x4xf32>
      %c0_79 = arith.constant 0 : index
      %c0_80 = arith.constant 0 : index
      %149 = vector.load %arg12[%c0_79, %c0_80] : memref<8x4xf32, #tpu.memory_space<vmem>>, vector<8x4xf32>
      %150 = tpu.reciprocal %149 {approx = true} : vector<8x4xf32> -> vector<8x4xf32>
      %151 = arith.mulf %148, %150 : vector<8x4xf32>
      %c0_81 = arith.constant 0 : index
      %c0_82 = arith.constant 0 : index
      %152 = vector.load %arg13[%c0_81, %c0_82] : memref<8x64xf32, #tpu.memory_space<vmem>>, vector<8x16xf32>
      %153 = vector.extract_strided_slice %151 {offsets = [0, 0], sizes = [8, 1], strides = [1, 1]} : vector<8x4xf32> to vector<8x1xf32>
      %154 = vector.broadcast %153 : vector<8x1xf32> to vector<8x16xf32>
      %155 = arith.mulf %152, %154 : vector<8x16xf32>
      %c0_83 = arith.constant 0 : index
      %c0_84 = arith.constant 0 : index
      %156 = vector.load %arg13[%c0_83, %c0_84] : memref<8x64xf32, #tpu.memory_space<vmem>>, vector<8x16xf32>
      tpu.vector_store %arg13[%c0_83, %c0_84], %155 {strides = array<i32>} : memref<8x64xf32, #tpu.memory_space<vmem>>, vector<8x16xf32>,
      %c0_85 = arith.constant 0 : index
      %c16_86 = arith.constant 16 : index
      %157 = vector.load %arg13[%c0_85, %c16_86] : memref<8x64xf32, #tpu.memory_space<vmem>>, vector<8x16xf32>
      %158 = vector.extract_strided_slice %151 {offsets = [0, 1], sizes = [8, 1], strides = [1, 1]} : vector<8x4xf32> to vector<8x1xf32>
      %159 = vector.broadcast %158 : vector<8x1xf32> to vector<8x16xf32>
      %160 = arith.mulf %157, %159 : vector<8x16xf32>
      %c0_87 = arith.constant 0 : index
      %c16_88 = arith.constant 16 : index
      %161 = vector.load %arg13[%c0_87, %c16_88] : memref<8x64xf32, #tpu.memory_space<vmem>>, vector<8x16xf32>
      tpu.vector_store %arg13[%c0_87, %c16_88], %160 {strides = array<i32>} : memref<8x64xf32, #tpu.memory_space<vmem>>, vector<8x16xf32>,
      %c0_89 = arith.constant 0 : index
      %c32_90 = arith.constant 32 : index
      %162 = vector.load %arg13[%c0_89, %c32_90] : memref<8x64xf32, #tpu.memory_space<vmem>>, vector<8x16xf32>
      %163 = vector.extract_strided_slice %151 {offsets = [0, 2], sizes = [8, 1], strides = [1, 1]} : vector<8x4xf32> to vector<8x1xf32>
      %164 = vector.broadcast %163 : vector<8x1xf32> to vector<8x16xf32>
      %165 = arith.mulf %162, %164 : vector<8x16xf32>
      %c0_91 = arith.constant 0 : index
      %c32_92 = arith.constant 32 : index
      %166 = vector.load %arg13[%c0_91, %c32_92] : memref<8x64xf32, #tpu.memory_space<vmem>>, vector<8x16xf32>
      tpu.vector_store %arg13[%c0_91, %c32_92], %165 {strides = array<i32>} : memref<8x64xf32, #tpu.memory_space<vmem>>, vector<8x16xf32>,
      %c0_93 = arith.constant 0 : index
      %c48_94 = arith.constant 48 : index
      %167 = vector.load %arg13[%c0_93, %c48_94] : memref<8x64xf32, #tpu.memory_space<vmem>>, vector<8x16xf32>
      %168 = vector.extract_strided_slice %151 {offsets = [0, 3], sizes = [8, 1], strides = [1, 1]} : vector<8x4xf32> to vector<8x1xf32>
      %169 = vector.broadcast %168 : vector<8x1xf32> to vector<8x16xf32>
      %170 = arith.mulf %167, %169 : vector<8x16xf32>
      %c0_95 = arith.constant 0 : index
      %c48_96 = arith.constant 48 : index
      %171 = vector.load %arg13[%c0_95, %c48_96] : memref<8x64xf32, #tpu.memory_space<vmem>>, vector<8x16xf32>
      tpu.vector_store %arg13[%c0_95, %c48_96], %170 {strides = array<i32>} : memref<8x64xf32, #tpu.memory_space<vmem>>, vector<8x16xf32>,
      %c0_97 = arith.constant 0 : index
      %c0_98 = arith.constant 0 : index
      %172 = vector.load %arg13[%c0_97, %c0_98] : memref<8x64xf32, #tpu.memory_space<vmem>>, vector<8x64xf32>
      %173 = arith.truncf %172 : vector<8x64xf32> to vector<8x64xbf16>
      %c0_99 = arith.constant 0 : index
      %c0_100 = arith.constant 0 : index
      %174 = vector.load %arg8[%c0_99, %c0_100] : memref<64x32xbf16, #tpu.memory_space<vmem>>, vector<64x32xbf16>
      %cst_101 = arith.constant dense<0.000000e+00> : vector<8x32xf32>
      %175 = tpu.matmul %173, %174, %cst_101 {dimension_numbers = #tpu.dot_dimension_numbers<[1], [0], [0], [1], [0, 0, 1, 1], [], []>} : vector<8x64xbf16>, vector<64x32xbf16>, vector<8x32xf32> -> vector<8x32xf32>
      %c0_102 = arith.constant 0 : index
      %c0_103 = arith.constant 0 : index
      %c0_104 = arith.constant 0 : index
      %c0_105 = arith.constant 0 : index
      %176 = vector.load %arg9[%c0_102, %c0_103, %c0_104, %c0_105] : memref<1x1x8x32xf32, #tpu.memory_space<vmem>>, vector<1x1x8x32xf32>
      %177 = vector.shape_cast %176 : vector<1x1x8x32xf32> to vector<8x32xf32>
      %178 = vector.shape_cast %175 : vector<8x32xf32> to vector<1x1x8x32xf32>
      tpu.vector_store %arg9[%c0_102, %c0_103, %c0_104, %c0_105], %178 {strides = array<i32>} : memref<1x1x8x32xf32, #tpu.memory_space<vmem>>, vector<1x1x8x32xf32>,
    } else {
    }
    return
  }
  func.func @transform_0(%arg0: i32, %arg1: i32, %arg2: i32) -> (i32, i32, i32, i32) {
    %c0_i32 = arith.constant 0 : i32
    %c0_i32_0 = arith.constant 0 : i32
    %c0_i32_1 = arith.constant 0 : i32
    return %arg0, %arg1, %c0_i32, %c0_i32_0 : i32, i32, i32, i32
  }
  func.func @transform_1(%arg0: i32, %arg1: i32, %arg2: i32) -> (i32, i32, i32, i32) {
    %c0_i32 = arith.constant 0 : i32
    %c0_i32_0 = arith.constant 0 : i32
    %c0_i32_1 = arith.constant 0 : i32
    return %arg0, %c0_i32, %c0_i32_0, %arg2 : i32, i32, i32, i32
  }
  func.func @transform_2(%arg0: i32, %arg1: i32, %arg2: i32) -> (i32, i32) {
    %c0_i32 = arith.constant 0 : i32
    %c0_i32_0 = arith.constant 0 : i32
    %c0_i32_1 = arith.constant 0 : i32
    return %c0_i32, %c0_i32_0 : i32, i32
  }
  func.func @transform_3(%arg0: i32, %arg1: i32, %arg2: i32) -> (i32, i32) {
    %c0_i32 = arith.constant 0 : i32
    %c0_i32_0 = arith.constant 0 : i32
    %c0_i32_1 = arith.constant 0 : i32
    return %c0_i32, %c0_i32_0 : i32, i32
  }
  func.func @transform_4(%arg0: i32, %arg1: i32, %arg2: i32) -> (i32, i32) {
    %c0_i32 = arith.constant 0 : i32
    %c0_i32_0 = arith.constant 0 : i32
    %c0_i32_1 = arith.constant 0 : i32
    return %c0_i32, %c0_i32_0 : i32, i32
  }
  func.func @transform_5(%arg0: i32, %arg1: i32, %arg2: i32) -> (i32, i32) {
    %c0_i32 = arith.constant 0 : i32
    %c0_i32_0 = arith.constant 0 : i32
    %c0_i32_1 = arith.constant 0 : i32
    return %c0_i32, %c0_i32_0 : i32, i32
  }
  func.func @transform_6(%arg0: i32, %arg1: i32, %arg2: i32) -> (i32, i32, i32, i32) {
    %c0_i32 = arith.constant 0 : i32
    %c0_i32_0 = arith.constant 0 : i32
    %c0_i32_1 = arith.constant 0 : i32
    return %arg0, %arg1, %c0_i32, %c0_i32_0 : i32, i32, i32, i32
  }
}

</mosaic_0001>

<bundles_post_ra>
// kernel: tpu_custom_call.1
= control target key start
LH: loop header
LB: loop body
LE: loop exit
PB: predicated region body
PF: predicated region fallthrough
CT: control target
= control target key end

     0   :  { %s2448_s0 = inlined_call_operand.vmem [shape: bf16[2,8,8,32], index: 0, kind: input, shape index: {}]   ;;  %s2449_s1 = inlined_call_operand.hbm [shape: bf16[2,4,8,8], index: 1, kind: input, shape index: {}]   ;;  %s2450_s2 = inlined_call_operand.hbm [shape: bf16[32,64], index: 2, kind: input, shape index: {}]   ;;  %s2451_s3 = inlined_call_operand.hbm [shape: bf16[32,128], index: 3, kind: input, shape index: {}]   ;;  %s2452_s4 = inlined_call_operand.vmem [shape: bf16[32,4], index: 4, kind: input, shape index: {}]   ;;  %s2453_s5 = inlined_call_operand.vmem [shape: bf16[64,32], index: 5, kind: input, shape index: {}]   ;;  %s2454_s6 = inlined_call_operand.hbm [shape: f32[2,8,8,32], index: 6, kind: output, shape index: {}]  }
   0x1   :  { %2466 = sst [smem:[#allocation22_spill]] %s2450_s2 }
   0x2   :  { %2467 = sst [smem:[#allocation23_spill]] %s2451_s3 }
   0x3   :  { %2468 = sst [smem:[#allocation24_spill]] %s2453_s5 }
   0x4   :  { %2469 = sst [smem:[#allocation25_spill]] %s2454_s6 }
   0x5   :  { %11 = vsyncpa [#allocation7], 0 }
   0x6   :  { %13 = vsyncpa [#allocation7 + $0x1], 0 }
   0x7   :  { %14 = vsyncpa [#allocation10], 0 }
   0x8   :  { %15 = vsyncpa [#allocation8], 0 }
   0x9   :  { %17 = vsyncpa [#allocation8 + $0x1], 0  ;;  %s1989_s21 = smov 0   ;;  %s1991_s22 = smov 0  }
   0xa   :  { %s1993_s23 = smov 0   ;;  %s1995_s24 = smov 0  }
   0xb   :  { %s1997_s25 = smov 0   ;;  %s1999_s26 = smov 0  }
   0xc   :  { %s2001_s27 = smov 0   ;;  %s2003_s28 = smov 0  }
   0xd   :  { %s2005_s29 = smov 0   ;;  %s2007_s30 = smov 0  }
   0xe   :  { %s2009_s7 = smov 0  }
   0xf LB: > { %2470 = sst [smem:[#allocation16_spill]] %s1892_s21  ;;  %s1377_s8 = sadd.s32 4294967295, %s1932_s7   ;;  %s1932_s7 = sphi %s2009_s7, %s23_s7   ;;  %s1928_s30 = sphi %s2007_s30, %s2506_s30   ;;  %s1924_s29 = sphi %s2005_s29, %s2505_s29   ;;  %s1920_s28 = sphi %s2003_s28, %s2504_s28   ;;  %s1916_s27 = sphi %s2001_s27, %s2497_s27   ;;  %s1912_s26 = sphi %s1999_s26, %s2503_s26   ;;  %s1908_s25 = sphi %s1997_s25, %s2502_s25   ;;  %s1904_s24 = sphi %s1995_s24, %s2501_s24   ;;  %s1900_s23 = sphi %s1993_s23, %s2500_s23   ;;  %s1896_s22 = sphi %s1991_s22, %s2499_s22   ;;  %s1892_s21 = sphi %s1989_s21, %s2496_s21  }
  0x10   : > { %2471 = sst [smem:[#allocation17_spill]] %s1896_s22  ;;  %s1378_s9 = sadd.s32 4294967294, %s1932_s7  }
  0x11   : > { %2472 = sst [smem:[#allocation18_spill]] %s1924_s29  ;;  %p92_p0 = scmp.ne.s32.totalorder %s1908_s25, %s1904_s24 }
  0x12   : > { %p2045_p1 = scmp.eq.s32.totalorder %s1377_s8, 0  ;;  %p201_p2 = scmp.ne.s32.totalorder %s1900_s23, %s1896_s22 }
  0x13   : > { %p202_p4 = scmp.eq.s32.totalorder %s1377_s8, 15  ;;  %p207_p5 = scmp.ne.s32.totalorder %s1896_s22, %s1892_s21 }
  0x14   : > { %p2054_p3 = por %p2045_p1, %p92_p0  ;;  %p208_p6 = scmp.eq.s32.totalorder %s1378_s9, 15 }
  0x15   : > { %p2060_p7 = por %p202_p4, %p201_p2  ;;  %p1379_p8 = scmp.ge.s32.totalorder %s1932_s7, 1 }
  0x16   : > { %p2065_p9 = por %p208_p6, %p207_p5  ;;  %p215_p10 = scmp.lt.s32.totalorder %s1932_s7, 17 }
  0x17   : > { %s2475_s13 = scalar_select %p2060_p7, 1, 0 }
  0x18   : > { %s2477_s14 = scalar_select %p2065_p9, 1, 0 }
  0x19   : > { %2476 = sst [smem:[#allocation19_spill]] %s2475_s13  ;;  %p2070_p11 = pnand %p1379_p8, %p215_p10 }
  0x1a   : > { %2478 = sst [smem:[#allocation20_spill]] %s2477_s14  ;;  %s1934_s16 = smov [#allocation9]  }
  0x1b   : > { %s227_s17 = sshll.u32 %s1934_s16, 4  ;;  %p1558_p12 = pneg %p2070_p11  ;;  %s228_s17 = int_to_ptr.vmem [resolvable:$true] %s227_s17 }
  0x1c   : > { %s1935_s19 = smov [#allocation11]   ;;  %s1739_s24 = scalar_lea.vmem %s228_s17, 256 }
  0x1d   : > { %p2078_p13 = pnand %p1558_p12, %p2045_p1  ;;  %s240_s20 = sshll.u32 %s1935_s19, 4  ;;  %s241_s20 = int_to_ptr.vmem [resolvable:$true] %s240_s20 }
  0x1e   : > { %p1740_p2 = scmp.ne.s32.totalorder %s228_s17, %s1739_s24  ;;  %p1747_p6 = scmp.lt.s32.totalorder %s228_s17, %s228_s17 }
  0x1f   : > { %p1730_p0 = pneg %p2078_p13  ;;  %p1748_p8 = scmp.lt.s32.totalorder %s1739_s24, %s1739_s24 }
  0x21   : > { %p1742_p4 = pnand %p1740_p2, %p1730_p0  ;;  %p1749_p10 = por %p1748_p8, %p1747_p6 }
  0x23   : > { %p1743_p5 = pneg %p1742_p4 }
  0x25   : > { %p1750_p12 = pnand %p1749_p10, %p1743_p5 }
  0x27   : > { %1753 = shalt.err (!%p1750_p12)
}
  0x28   : > { %s2456_s8 = smov 64   ;;  %s2457_s9 = smov 4  }
  0x29   : > { %s2481_s2 = sld [smem:[#allocation22_spill]]  ;;  %s1765_s11 = scalar_lea.vmem %s241_s20, 256 }
  0x2a   : > { %p1766_p2 = scmp.ne.s32.totalorder %s241_s20, %s1765_s11  ;;  %p1773_p5 = scmp.lt.s32.totalorder %s241_s20, %s241_s20 }
  0x2b   : > { %p1774_p8 = scmp.lt.s32.totalorder %s1765_s11, %s1765_s11 }
  0x2c   : > { %p1768_p4 = pnand %p1766_p2, %p1730_p0 }
  0x2d   : > { %p1775_p10 = por %p1774_p8, %p1773_p5 }
  0x2e   : > { %p1769_p6 = pneg %p1768_p4 }
  0x2f   : > { %1561 = dma.hbm_to_vmem [thread:$0]  (!%p2078_p13), %s2481_s2, 256, %s228_s17, [#allocation10], %s2456_s8, %s2456_s8, %s2457_s9  }
  0x30   : > { %p1776_p12 = pnand %p1775_p10, %p1769_p6 }
  0x32   : > { %1779 = shalt.err (!%p1776_p12)
}
  0x33   : > { %s2482_s3 = sld [smem:[#allocation23_spill]]  ;;  %s38_s11 = sadd.s32 1, %s1924_s29 }
  0x34   : > { %s42_s17 = sadd.s32 1, %s1928_s30  ;;  %p40_p0 = scmp.ge.s32.totalorder %s38_s11, 8 }
  0x35   : > { %s79_s18 = sadd.s32 1, %s1912_s26  ;;  %p86_p2 = scmp.ne.s32.totalorder %s1912_s26, %s1908_s25 }
  0x36   : > { %p87_p4 = scmp.eq.s32.totalorder %s1932_s7, 0  ;;  %s2508_s11 = smov (%p40_p0, %s38_s11), 0 }
  0x37   : > { %2483 = sst [smem:[#allocation21_spill]] %s2508_s11  ;;  %s2510_s17 = smov (!%p40_p0, %s42_s17), %s1928_s30 }
  0x38   : > { %p2115_p6 = por %p87_p4, %p86_p2  ;;  %s187_s16 = ssub.s32 %s1924_s29, %s2508_s11 }
  0x39   : > { %1564 = dma.hbm_to_vmem [thread:$0]  (!%p2078_p13), %s2482_s3, 256, %s241_s20, [#allocation10], %s2456_s8, %s2456_s8, %s2457_s9  }
  0x3a   : > { %p44_p13 = scmp.ge.s32.totalorder %s2510_s17, 2  ;;  %p1575_p5 = scmp.lt.s32.totalorder %s1932_s7, 16 }
  0x3b   : > { %s271_s20 = sand.u32 1, %s1912_s26   ;;  %s1422_s19 = sshll.u32 %s1928_s30, 8 }
  0x3c   : > { %s2512_s17 = smov (%p44_p13, %s2510_s17), 0  ;;  %s1383_s24 = sshll.u32 %s271_s20, 4 }
  0x3d   : > { %s74_s8 = ssub.s32 %s1928_s30, %s2512_s17  ;;  %s282_s21 = scalar_lea.hbm %s2449_s1, %s1422_s19 }
  0x3e   : > { %p77_p8 = scmp.eq.s32.totalorder %s74_s8, 0  ;;  %s188_s9 = sor.u32 %s187_s16, %s74_s8 }
  0x3f   : > { %p189_p10 = scmp.eq.s32.totalorder %s188_s9, 0  ;;  %s2485_s11 = sadd.s32 1, %s1900_s23 }
  0x40   : > { %s2132_s6 = scalar_select %p77_p8, %s1912_s26, %s79_s18  }
  0x41   : > { %s2137_s29 = scalar_select %p189_p10, %s1900_s23, %s2485_s11  }
  0x42   : > { %s275_s13 = scalar_lea.vmem [#allocation6], %s1383_s24  ;;  %p2143_p12 = pnand %p1575_p5, %p2115_p6 }
  0x43   : > { %s283_s22 = sshll.u32 %s275_s13, 4  ;;  %s272_s8 = scalar_lea.sflag [#allocation7], %s271_s20  ;;  %s284_s22 = int_to_ptr.vmem [resolvable:$true] %s283_s22 }
  0x44   : > { %p1782_p0 = pneg %p2143_p12  ;;  %s1793_s2 = scalar_lea.vmem %s284_s22, 256 }
  0x45   : > { %p1794_p2 = scmp.ne.s32.totalorder %s284_s22, %s1793_s2  ;;  %s1938_s3 = smov [#allocation6]  }
  0x46   : > { %s1798_s9 = sshll.u32 %s1938_s3, 4  ;;  %s1799_s9 = int_to_ptr.vmem [resolvable:$false] %s1798_s9 }
  0x47   : > { %p1796_p4 = pnand %p1794_p2, %p1782_p0  ;;  %s1800_s11 = scalar_lea.vmem %s1799_s9, 512 }
  0x48   : > { %p1801_p8 = scmp.lt.s32.totalorder %s284_s22, %s1799_s9  ;;  %p1802_p10 = scmp.lt.s32.totalorder %s1800_s11, %s1793_s2 }
  0x49   : > { %p1797_p13 = pneg %p1796_p4 }
  0x4a   : > { %p1803_p9 = por %p1802_p10, %p1801_p8 }
  0x4c   : > { %p1804_p6 = pnand %p1803_p9, %p1797_p13 }
  0x4e   : > { %1807 = shalt.err (!%p1804_p6)
}
  0x4f   : > { %s2487_s13 = smov 4   ;;  %s2488_s18 = smov 64  }
  0x50   : > { %1568 = dma.hbm_to_vmem [thread:$0]  (!%p2143_p12), %s282_s21, 256, %s284_s22, %s272_s8, %s2488_s18, %s2488_s18, %s2487_s13  }
  0x51   : > { %295 = sbr.rel (%p2070_p11) target bundleno = 1501 (0x5dd), region = 44  ;;  %s297_s14 = sand.u32 (!%p2070_p11), 1, %s1908_s25  }
  0x52   : > { %s2157_s16 = sshll.u32 (!%p2070_p11), %s297_s14, 4  ;;  %s298_s20 = scalar_lea.sflag (!%p2070_p11), [#allocation7], %s297_s14 }
  0x53   : > { %s301_s19 = scalar_lea.vmem (!%p2070_p11), [#allocation6], %s2157_s16 }
  0x56   : > { %1879 = dma.done.wait (%p2054_p3), %s298_s20, 256  }
  0x57   : > { %1881 = vsyncadd (%p2054_p3), %s298_s20, 4294967040 }
  0x58   : > { %1883 = dma.done.wait (%p2045_p1), [#allocation10], 512  }
  0x59   : > { %1885 = vsyncadd (%p2045_p1), [#allocation10], 4294966784  ;;  %p346_p9 = scmp.lt.s32.totalorder %s1920_s28, 1  ;;  %p348_p11 = scmp.lt.s32.totalorder %s1916_s27, 7  ;;  %v1939_v0 = vmov 0.0   ;;  %vm1940_vm0 = vmmov 0  }
  0x5a   : > { %1462 = vmatprep.subr.bf16.mxu0 %v1939_v0  ;;  %1470 = vmatprep.subr.bf16.mxu1 %v1939_v0  ;;  %v1695_v1 = vld [vmem:[#allocation9 + $0x8] sm:$0xff]   ;;  %v1696_v2 = vld [vmem:[#allocation11 + $0x8] sm:$0xff]   ;;  %v1697_v3 = vld [vmem:[#allocation9] sm:$0xff]   ;;  %vm376_vm1 = vcmask 261120   ;;  %vm421_vm2 = vcmask 519168   ;;  %vm504_vm3 = vcmask 130048  }
  0x5b   : > { %1466 = vmatprep.mubr.msk.bf16.mxu0 %vm1940_vm0, %v1939_v0  ;;  %1474 = vmatprep.mubr.msk.bf16.mxu1 %vm1940_vm0, %v1939_v0  ;;  %s347_s5 = scalar_select %p346_p9, %s1920_s28, 1  ;;  %v1698_v4 = vld [vmem:[#allocation11] sm:$0xff]   ;;  %vm552_vm4 = vcmask 64512   ;;  %vm423_vm5 = vcmask 31744   ;;  %v1944_v37 = vmov -inf   ;;  %v1945_v38 = vmov 0  }
  0x5c   : > { %s349_s21 = scalar_select %p348_p11, %s1916_s27, 7  ;;  %1463 = vmatpush3.bf16.msra.mxu0 %v1695_v1  ;;  %1471 = vmatpush3.bf16.msra.mxu1 %v1696_v2  ;;  %v1424_v29 = vld [vmem:[%s301_s19] sm:$0xff]   ;;  %424 = vst.msk [vmem:[#allocation3] sm:$0xff] %vm423_vm5, %v1944_v37  ;;  %425 = vst.msk [vmem:[#allocation4] sm:$0xff] %vm423_vm5, %v1939_v0  ;;  %v1431_v43 = vld [vmem:[%s301_s19 + $0x8] sm:$0xff]   ;;  %v1946_v56 = vmov 1  }
  0x5d   : > { %s1391_s22 = sshll.u32 %s347_s5, 3  ;;  %1464 = vmatprep.subr.bf16.mxu0 %v1939_v0  ;;  %1472 = vmatprep.subr.bf16.mxu1 %v1939_v0  ;;  %s1941_s2 = smov 112   ;;  %v1425_v30 = vunpack.c.l.bf16 %v1424_v29  ;;  %v1426_v39 = vunpack.c.h.bf16 %v1424_v29  ;;  %v1429_v46 = vunpack.c.l.bf16 %v1431_v43  ;;  %v1430_v53 = vunpack.c.h.bf16 %v1431_v43 }
  0x5e   : > { %s351_s10 = sadd.s32 %s1391_s22, %s349_s21  ;;  %s1942_s3 = smov 96   ;;  %1685 = vset.pattern.permute.xlu1 %v1945_v38  ;;  %1686 = vset.pattern.permute.xlu0 %v1946_v56  ;;  %vm574_vm6 = vcmask 7168   ;;  %vm712_vm7 = vcmask 15368   ;;  %vm850_vm8 = vcmask 23568   ;;  %vm988_vm9 = vcmask 31768  }
  0x5f   : > { %s1392_s12 = sshll.u32 %s351_s10, 2  ;;  %s1943_s9 = smov 80   ;;  %vm591_vm10 = vcmask 1043456   ;;  %vm426_vm11 = vcmask 523264   ;;  %vm776_vm12 = vcmask 261248   ;;  %vm914_vm13 = vcmask 392448  }
  0x60   : > { %s2181_s8 = scalar_lea.vmem %s2448_s0, %s1392_s12  ;;  %1465 = vmatpush3.bf16.msra.mxu0 %v1697_v3  ;;  %1473 = vmatpush3.bf16.msra.mxu1 %v1698_v4  ;;  %v1947_v3 = vmov 2   ;;  %v1700_v4 = vld [vmem:[%s2452_s4 + $0x8] sm:$0xff]   ;;  %s1948_s16 = smov 64   ;;  %427 = vst.msk [vmem:[#allocation5] sm:$0xff] %vm426_vm11, %v1939_v0  ;;  %vm1052_vm14 = vcmask 523648  }
  0x61   : > { %v359_v5 = vld [vmem:[%s2181_s8] sm:$0xf]  ;;  %1478 = vmatprep.subr.bf16.mxu0 %v1939_v0  ;;  %1484 = vmatprep.subr.bf16.mxu1 %v1939_v0  ;;  %s1950_s20 = smov 48   ;;  %s1951_s19 = smov 32  }
  0x62   : > { %v433_v6 = vld [vmem:[%s2181_s8] sm:$0xf]  ;;  %s1952_s5 = smov 16   ;;  %s2489_s10 = sld [smem:[#allocation24_spill]] }
  0x63   : > { %1467 = vmatmul.mubr.msk.bf16.vlgmr.msra.gmra.mxu0 %vm376_vm1, %v359_v5  ;;  %1475 = vmatmul.mubr.msk.bf16.vlgmr.msra.gmra.mxu1 %vm376_vm1, %v433_v6  ;;  %v2243_v62 = vld [vmem:[#allocation3] sm:$0xff]  ;;  %v1057_v6 = vld [vmem:[%s2181_s8] sm:$0xf]  ;;  %s1418_s18 = sshll.u32 %s1920_s28, 3  ;;  %s2492_s12 = sld [smem:[#allocation25_spill]] }
  0x64   : > { %1480 = vmatprep.mubr.msk.bf16.mxu0 %vm1940_vm0, %v1939_v0  ;;  %1486 = vmatprep.mubr.msk.bf16.mxu1 %vm1940_vm0, %v1939_v0  ;;  %v1701_v5 = vld [vmem:[%s2452_s4] sm:$0xff]  }
 0x123   : > { %v414_v7 = vpop.f32.mrf.mxu0  ;;  %v488_v9 = vpop.f32.mrf.mxu1 }
 0x124   : > { %v420_v8 = vpack.c.bf16 %v414_v7, %v414_v7  ;;  %v2195_v10 = vpack.c.bf16 %v488_v9, %v488_v9 }
 0x125   : > { %v1468_v11 = vpop.f32.mrf.mxu0  ;;  %v1476_v12 = vpop.f32.mrf.mxu1 }
 0x126   : > { %422 = vst.msk [vmem:[#allocation2] sm:$0xf] %vm421_vm2, %v420_v8  ;;  %642 = vrot.lane.b32.xlu0 %v2195_v10, %s1941_s2  ;;  %v509_v14 = vsel %vm504_vm3, %v2195_v10, 0  ;;  %780 = vrot.lane.b32.xlu1 %v2195_v10, %s1942_s3 }
 0x127   : > { %v417_v13 = vpop.f32.mrf.mxu0  ;;  %v491_v15 = vpop.f32.mrf.mxu1  ;;  %1479 = vmatpush3.bf16.xpose.msra.mxu0 %v509_v14 }
 0x128   : > { %1490 = vmatprep.subr.bf16.mxu0 %v1939_v0 }
 0x129   : > { %v1469_v16 = vpop.f32.mrf.mxu0  ;;  %v1477_v17 = vpop.f32.mrf.mxu1 }
 0x12a   : > { %v1949_v16 = vmov 3  }
 0x12d   : > { %v495_v18 = vld [vmem:[#allocation2] sm:$0xf] }
 0x12e   : > { %v1401_v19 = vcombine.low %v495_v18, %v495_v18  ;;  %1481 = vmatmul.mubr.msk.bf16.vlgmr.msra.gmra.mxu0 %vm504_vm3, %v495_v18 }
 0x12f   : > { %1492 = vmatprep.mubr.msk.bf16.mxu0 %vm1940_vm0, %v1939_v0 }
 0x130   : > { %778 = vrot.lane.b32.xlu1 %v1401_v19, %s1942_s3  ;;  %640 = vrot.lane.b32.xlu0 %v1401_v19, %s1941_s2 }
 0x134   : > { %916 = vrot.lane.b32.xlu1 %v1401_v19, %s1943_s9  ;;  %918 = vrot.lane.b32.xlu0 %v2195_v10, %s1943_s9  ;;  %s2490_s9 = sld [smem:[#allocation17_spill]] }
 0x13a   : > { %s343_s13 = sand.u32 1, %s2490_s9  }
 0x13b   : > { %s1390_s14 = sshll.u32 %s343_s13, 3  ;;  %s1235_s28 = scalar_lea.sflag [#allocation8], %s343_s13 }
 0x198   : > { %v643_v20 = vpop.permute.xlu0 %642  ;;  %v781_v22 = vpop.permute.xlu1 %780 }
 0x199   : > { %v648_v21 = vsel %vm504_vm3, %v643_v20, 0  ;;  %v786_v24 = vsel %vm504_vm3, %v781_v22, 0 }
 0x19a   : > { %1491 = vmatpush3.bf16.xpose.msra.mxu0 %v648_v21 }
 0x19b   : > { %1502 = vmatprep.subr.bf16.mxu0 %v1939_v0 }
 0x1a2   : > { %v641_v23 = vpop.permute.xlu0 %640  ;;  %v779_v26 = vpop.permute.xlu1 %778 }
 0x1a3   : > { %1493 = vmatmul.mubr.msk.bf16.vlgmr.msra.gmra.mxu0 %vm504_vm3, %v641_v23 }
 0x1a4   : > { %1503 = vmatpush3.bf16.xpose.msra.mxu0 %v786_v24  ;;  %1504 = vmatprep.mubr.msk.bf16.mxu0 %vm1940_vm0, %v1939_v0 }
 0x1a5   : > { %1514 = vmatprep.subr.bf16.mxu0 %v1939_v0 }
 0x1a6   : > { %v919_v25 = vpop.permute.xlu0 %918  ;;  %v917_v28 = vpop.permute.xlu1 %916 }
 0x1a7   : > { %v924_v27 = vsel %vm504_vm3, %v919_v25, 0 }
 0x1ab   : > { %1505 = vmatmul.mubr.msk.bf16.vlgmr.msra.gmra.mxu0 %vm504_vm3, %v779_v26 }
 0x1ac   : > { %1515 = vmatpush3.bf16.xpose.msra.mxu0 %v924_v27  ;;  %1516 = vmatprep.mubr.msk.bf16.mxu0 %vm1940_vm0, %v1939_v0 }
 0x1ad   : > { %1526 = vmatprep.subr.bf16.mxu0 %v1939_v0 }
 0x1b3   : > { %1517 = vmatmul.mubr.msk.bf16.vlgmr.msra.gmra.mxu0 %vm504_vm3, %v917_v28 }
 0x1b4   : > { %1530 = vmatprep.mubr.msk.bf16.mxu0 %vm1940_vm0, %v1939_v0  ;;  %1527 = vmatpush3.bf16.msra.mxu0 %v1700_v4 }
 0x1b5   : > { %1528 = vmatprep.subr.bf16.mxu0 %v1939_v0 }
 0x1b8   : > { %1529 = vmatpush3.bf16.msra.mxu0 %v1701_v5 }
 0x1bb   : > { %1531 = vmatmul.mubr.msk.bf16.vlgmr.msra.gmra.mxu0 %vm376_vm1, %v1057_v6 }
 0x1ee   : > { %v545_v31 = vpop.f32.mrf.mxu0 }
 0x1ef   : > { %v2223_v32 = vadd.f32 %v1425_v30, %v545_v31 }
 0x1f0   : > { %v1482_v33 = vpop.f32.mrf.mxu0 }
 0x1f1   : > { %v553_v34 = vsel %vm552_vm4, %v2223_v32, -inf }
 0x1f2   : > { %554 = vmax.xlane.f32.xlu0 %v553_v34  ;;  %v548_v35 = vpop.f32.mrf.mxu0 }
 0x1f4   : > { %v1483_v36 = vpop.f32.mrf.mxu0 }
 0x263   : > { %v684_v40 = vpop.f32.mrf.mxu0 }
 0x264   : > { %v2229_v41 = vadd.f32 %v1426_v39, %v684_v40 }
 0x265   : > { %v1494_v42 = vpop.f32.mrf.mxu0 }
 0x266   : > { %v691_v44 = vsel %vm552_vm4, %v2229_v41, -inf }
 0x267   : > { %692 = vmax.xlane.f32.xlu1 %v691_v44  ;;  %v687_v45 = vpop.f32.mrf.mxu0 }
 0x269   : > { %v1495_v47 = vpop.f32.mrf.mxu0 }
 0x26b   : > { %v822_v48 = vpop.f32.mrf.mxu0 }
 0x26c   : > { %v2235_v49 = vadd.f32 %v1429_v46, %v822_v48 }
 0x26d   : > { %v1506_v50 = vpop.f32.mrf.mxu0 }
 0x26e   : > { %v829_v51 = vsel %vm552_vm4, %v2235_v49, -inf }
 0x26f   : > { %830 = vmax.xlane.f32.xlu0 %v829_v51  ;;  %v825_v52 = vpop.f32.mrf.mxu0 }
 0x271   : > { %v1507_v54 = vpop.f32.mrf.mxu0 }
 0x273   : > { %v960_v55 = vpop.f32.mrf.mxu0 }
 0x274   : > { %v2239_v57 = vadd.f32 %v1430_v53, %v960_v55 }
 0x275   : > { %v1518_v58 = vpop.f32.mrf.mxu0 }
 0x276   : > { %v967_v59 = vsel %vm552_vm4, %v2239_v57, -inf }
 0x277   : > { %968 = vmax.xlane.f32.xlu0 %v967_v59  ;;  %v963_v60 = vpop.f32.mrf.mxu0 }
 0x279   : > { %v1519_v61 = vpop.f32.mrf.mxu0 }
 0x27a   : > { %v568_v61 = vld [vmem:[#allocation4] sm:$0xff] }
 0x27b   : > { %v555_v63 = vpop.xlane.xlu0 %554  ;;  %v1111_v54 = vpop.f32.mrf.mxu0 }
 0x27c   : > { %v2246_v1 = vmax.f32 %v2243_v62, %v555_v63 }
 0x27e   : > { %v557_v2 = vsub.f32 %v2243_v62, %v2246_v1  ;;  %576 = vst.msk [vmem:[#allocation3] sm:$0xff] %vm574_vm6, %v2246_v1  ;;  %562 = vperm.xlu1 %1685, %v2246_v1  }
 0x280   : > { %v558_v46 = vmul.f32 1.442695, %v557_v2 }
 0x282   : > { %1687 = vset.pattern.permute.xlu1 %v1947_v3 }
 0x285   : > { %v2263_v7 = vld [vmem:[#allocation3] sm:$0xff] }
 0x2f0   : > { %v693_v8 = vpop.xlane.xlu1 %692 }
 0x2f1   : > { %v2266_v9 = vmax.f32 %v2263_v7, %v693_v8 }
 0x2f3   : > { %v695_v11 = vsub.f32 %v2263_v7, %v2266_v9  ;;  %714 = vst.msk [vmem:[#allocation3] sm:$0xff] %vm712_vm7, %v2266_v9  ;;  %700 = vperm.xlu0 %1686, %v2266_v9  }
 0x2f5   : > { %v696_v56 = vmul.f32 1.442695, %v695_v11 }
 0x2f8   : > { %v831_v13 = vpop.xlane.xlu0 %830 }
 0x2f9   : > { %v563_v21 = vpop.permute.xlu1 %562 }
 0x2fa   : > { %v2273_v12 = vld [vmem:[#allocation3] sm:$0xff]  ;;  %v565_v22 = vsub.f32 %v2223_v32, %v563_v21 }
 0x2fb   : > { %v2276_v14 = vmax.f32 %v2273_v12, %v831_v13 }
 0x2fc   : > { %v566_v23 = vmul.f32 1.442695, %v565_v22 }
 0x2fd   : > { %v833_v15 = vsub.f32 %v2273_v12, %v2276_v14  ;;  %852 = vst.msk [vmem:[#allocation3] sm:$0xff] %vm850_vm8, %v2276_v14  ;;  %838 = vperm.xlu1 %1687, %v2276_v14  }
 0x2fe   : > { %1706 = vpow2.f32 %v566_v23 }
 0x2ff   : > { %v834_v2 = vmul.f32 1.442695, %v833_v15 }
 0x300   : > { %v969_v18 = vpop.xlane.xlu0 %968 }
 0x301   : > { %586 = vrot.lane.b32.xlu1 %v2195_v10, %s1948_s16  ;;  %s1246_s16 = sadd.s32 %s1916_s27, %s1418_s18  ;;  %s1953_s27 = smov [#allocation12]  }
 0x302   : > { %1688 = vset.pattern.permute.xlu1 %v1949_v16  ;;  %s1812_s8 = sshll.u32 %s1953_s27, 4  ;;  %s1813_s8 = int_to_ptr.vmem [resolvable:$false] %s1812_s8 }
 0x303   : > { %s1814_s2 = scalar_lea.vmem %s1813_s8, 256 }
 0x304   : > { %v2285_v17 = vld [vmem:[#allocation3] sm:$0xff] }
 0x305   : > { %v2288_v19 = vmax.f32 %v2285_v17, %v969_v18  ;;  %723 = vrot.lane.b32.xlu1 %v2195_v10, %s1950_s20 }
 0x307   : > { %v971_v20 = vsub.f32 %v2285_v17, %v2288_v19  ;;  %990 = vst.msk [vmem:[#allocation3] sm:$0xff] %vm988_vm9, %v2288_v19 }
 0x309   : > { %976 = vperm.xlu1 %1688, %v2288_v19   ;;  %v972_v8 = vmul.f32 1.442695, %v971_v20 }
 0x30b   : > { %v1707_v24 = vpop.eup %1706 }
 0x30c   : > { %v570_v25 = vsel %vm552_vm4, %v1707_v24, 0.0  ;;  %v584_v33 = vpack.c.bf16 %v1707_v24, %v1707_v24  ;;  %v1411_v24 = vmul.f32 -1.442695, %v1111_v54 }
 0x30d   : > { %861 = vrot.lane.b32.xlu1 %v2195_v10, %s1951_s19 }
 0x30e   : > { %1689 = vset.pattern.permute.xlu1 %v1945_v38 }
 0x311   : > { %999 = vrot.lane.b32.xlu1 %v2195_v10, %s1952_s5 }
 0x335   : > { %571 = vadd.xlane.f32.xlu1 %v570_v25  ;;  %v577_v25 = vld [vmem:[#allocation5] sm:$0xff] }
 0x36e   : > { %v701_v26 = vpop.permute.xlu0 %700 }
 0x36f   : > { %v703_v27 = vsub.f32 %v2229_v41, %v701_v26 }
 0x371   : > { %v704_v28 = vmul.f32 1.442695, %v703_v27 }
 0x373   : > { %1708 = vpow2.f32 %v704_v28 }
 0x378   : > { %v839_v29 = vpop.permute.xlu1 %838 }
 0x379   : > { %v841_v30 = vsub.f32 %v2235_v49, %v839_v29 }
 0x37b   : > { %v842_v31 = vmul.f32 1.442695, %v841_v30 }
 0x37c   : > { %v587_v10 = vpop.permute.xlu1 %586 }
 0x37d   : > { %1710 = vpow2.f32 %v842_v31  ;;  %v593_v32 = vsel %vm591_vm10, %v587_v10, 0 }
 0x37e   : > { %1485 = vmatpush3.bf16.msra.mxu1 %v593_v32 }
 0x37f   : > { %1496 = vmatprep.subr.bf16.mxu1 %v1939_v0 }
 0x380   : > { %v1709_v34 = vpop.eup %1708  ;;  %v724_v35 = vpop.permute.xlu1 %723 }
 0x381   : > { %v729_v36 = vsel %vm591_vm10, %v724_v35, 0  ;;  %1487 = vmatmul.mubr.msk.bf16.vlgmr.msra.gmra.mxu1 %vm552_vm4, %v584_v33  ;;  %v708_v37 = vsel %vm552_vm4, %v1709_v34, 0.0  ;;  %v722_v42 = vpack.c.bf16 %v1709_v34, %v1709_v34 }
 0x382   : > { %1497 = vmatpush3.bf16.msra.mxu1 %v729_v36  ;;  %709 = vadd.xlane.f32.xlu0 %v708_v37 }
 0x383   : > { %1498 = vmatprep.mubr.msk.bf16.mxu1 %vm1940_vm0, %v1939_v0  ;;  %1508 = vmatprep.subr.bf16.mxu1 %v1939_v0 }
 0x384   : > { %v977_v39 = vpop.permute.xlu1 %976 }
 0x385   : > { %v979_v40 = vsub.f32 %v2239_v57, %v977_v39  ;;  %v1532_v57 = vpop.f32.mrf.mxu0 }
 0x387   : > { %v980_v41 = vmul.f32 1.442695, %v979_v40  ;;  %v1114_v58 = vpop.f32.mrf.mxu0 }
 0x388   : > { %v862_v43 = vpop.permute.xlu1 %861 }
 0x389   : > { %1712 = vpow2.f32 %v980_v41  ;;  %v867_v44 = vsel %vm591_vm10, %v862_v43, 0  ;;  %1499 = vmatmul.mubr.msk.bf16.vlgmr.msra.gmra.mxu1 %vm552_vm4, %v722_v42  ;;  %v1533_v59 = vpop.f32.mrf.mxu0 }
 0x38a   : > { %v1711_v45 = vpop.eup %1710  ;;  %1509 = vmatpush3.bf16.msra.mxu1 %v867_v44  ;;  %1510 = vmatprep.mubr.msk.bf16.mxu1 %vm1940_vm0, %v1939_v0  ;;  %1714 = vpow2.f32 %v558_v46 }
 0x38b   : > { %v846_v47 = vsel %vm552_vm4, %v1711_v45, 0.0  ;;  %1520 = vmatprep.subr.bf16.mxu1 %v1939_v0  ;;  %v860_v49 = vpack.c.bf16 %v1711_v45, %v1711_v45  ;;  %1716 = vpow2.f32 %v696_v56 }
 0x38c   : > { %847 = vadd.xlane.f32.xlu1 %v846_v47  ;;  %v1000_v48 = vpop.permute.xlu1 %999  ;;  %1718 = vpow2.f32 %v834_v2 }
 0x38d   : > { %v1005_v50 = vsel %vm591_vm10, %v1000_v48, 0  ;;  %1720 = vpow2.f32 %v972_v8  ;;  %v1702_v48 = vld [vmem:[%s2489_s10 + $0x18] sm:$0xff]  }
 0x38e   : > { %1722 = vpow2.f32 %v1411_v24 }
 0x391   : > { %1511 = vmatmul.mubr.msk.bf16.vlgmr.msra.gmra.mxu1 %vm552_vm4, %v860_v49 }
 0x392   : > { %1521 = vmatpush3.bf16.msra.mxu1 %v1005_v50  ;;  %1522 = vmatprep.mubr.msk.bf16.mxu1 %vm1940_vm0, %v1939_v0 }
 0x393   : > { %1534 = vmatprep.subr.bf16.mxu1 %v1939_v0 }
 0x396   : > { %v1713_v51 = vpop.eup %1712 }
 0x397   : > { %v984_v52 = vsel %vm552_vm4, %v1713_v51, 0.0  ;;  %v998_v53 = vpack.c.bf16 %v1713_v51, %v1713_v51  ;;  %v1715_v55 = vpop.eup %1714 }
 0x398   : > { %985 = vadd.xlane.f32.xlu0 %v984_v52  ;;  %v1717_v60 = vpop.eup %1716  ;;  %v569_v62 = vmul.f32 %v1715_v55, %v568_v61 }
 0x399   : > { %1523 = vmatmul.mubr.msk.bf16.vlgmr.msra.gmra.mxu1 %vm552_vm4, %v998_v53  ;;  %v1719_v9 = vpop.eup %1718 }
 0x39a   : > { %1542 = vmatprep.mubr.msk.bf16.mxu1 %vm1940_vm0, %v1939_v0  ;;  %v1721_v12 = vpop.eup %1720  ;;  %1535 = vmatpush3.bf16.msra.mxu1 %v1702_v48 }
 0x39b   : > { %v1723_v19 = vpop.eup %1722  ;;  %1536 = vmatprep.subr.bf16.mxu1 %v1939_v0 }
 0x39c   : > { %v1120_v26 = vadd.f32 1.0, %v1723_v19 }
 0x39d   : > { %580 = vperm.xlu1 %1689, %v1715_v55  }
 0x39e   : > { %1724 = vrcp.f32 %v1120_v26 }
 0x3a1   : > { %1690 = vset.pattern.permute.xlu1 %v1947_v3 }
 0x3ab   : > { %v1725_v37 = vpop.eup %1724 }
 0x3ae   : > { %718 = vperm.xlu0 %1686, %v1717_v60  }
 0x3be   : > { %v572_v63 = vpop.xlane.xlu1 %571 }
 0x3bf   : > { %v573_v1 = vadd.f32 %v572_v63, %v569_v62 }
 0x3c1   : > { %575 = vst.msk [vmem:[#allocation4] sm:$0xff] %vm574_vm6, %v573_v1 }
 0x3c8   : > { %v706_v4 = vld [vmem:[#allocation4] sm:$0xff] }
 0x3c9   : > { %v707_v5 = vmul.f32 %v1717_v60, %v706_v4 }
 0x40b   : > { %v710_v6 = vpop.xlane.xlu0 %709 }
 0x40c   : > { %v711_v7 = vadd.f32 %v710_v6, %v707_v5 }
 0x40e   : > { %713 = vst.msk [vmem:[#allocation4] sm:$0xff] %vm712_vm7, %v711_v7 }
 0x415   : > { %v844_v11 = vld [vmem:[#allocation4] sm:$0xff]  ;;  %v848_v18 = vpop.xlane.xlu1 %847 }
 0x416   : > { %v845_v13 = vmul.f32 %v1719_v9, %v844_v11 }
 0x418   : > { %v849_v21 = vadd.f32 %v848_v18, %v845_v13 }
 0x419   : > { %v581_v17 = vpop.permute.xlu1 %580 }
 0x41a   : > { %851 = vst.msk [vmem:[#allocation4] sm:$0xff] %vm850_vm8, %v849_v21  ;;  %v583_v20 = vmul.f32 %v581_v17, %v577_v25 }
 0x421   : > { %v982_v14 = vld [vmem:[#allocation4] sm:$0xff]  ;;  %v986_v22 = vpop.xlane.xlu0 %985 }
 0x422   : > { %v983_v15 = vmul.f32 %v1721_v12, %v982_v14 }
 0x424   : > { %v987_v23 = vadd.f32 %v986_v22, %v983_v15 }
 0x426   : > { %989 = vst.msk [vmem:[#allocation4] sm:$0xff] %vm988_vm9, %v987_v23 }
 0x429   : > { %v719_v50 = vpop.permute.xlu0 %718 }
 0x42d   : > { %v1123_v30 = vld [vmem:[#allocation4] sm:$0xff] }
 0x42e   : > { %1726 = vrcp.f32 %v1123_v30 }
 0x43b   : > { %v1727_v39 = vpop.eup %1726 }
 0x43c   : > { %v1125_v42 = vmul.f32 %v1727_v39, %v1725_v37 }
 0x441   : > { %v629_v27 = vpop.f32.mrf.mxu1 }
 0x442   : > { %v635_v28 = vadd.f32 %v629_v27, %v583_v20 }
 0x443   : > { %v1488_v29 = vpop.f32.mrf.mxu1 }
 0x444   : > { %636 = vst.msk [vmem:[#allocation5] sm:$0xff] %vm504_vm3, %v635_v28 }
 0x445   : > { %v632_v31 = vpop.f32.mrf.mxu1 }
 0x447   : > { %v1489_v10 = vpop.f32.mrf.mxu1 }
 0x449   : > { %v765_v32 = vpop.f32.mrf.mxu1 }
 0x44a   : > { %772 = vrot.lane.b32.xlu1 %v765_v32, %s1952_s5 }
 0x44b   : > { %v1500_v33 = vpop.f32.mrf.mxu1  ;;  %v715_v49 = vld [vmem:[#allocation5] sm:$0xff] }
 0x44c   : > { %v721_v51 = vmul.f32 %v719_v50, %v715_v49 }
 0x44d   : > { %v768_v34 = vpop.f32.mrf.mxu1 }
 0x44e   : > { %856 = vperm.xlu1 %1690, %v1719_v9  }
 0x44f   : > { %v1501_v35 = vpop.f32.mrf.mxu1 }
 0x451   : > { %v903_v36 = vpop.f32.mrf.mxu1 }
 0x452   : > { %1691 = vset.pattern.permute.xlu1 %v1949_v16  ;;  %910 = vrot.lane.b32.xlu0 %v903_v36, %s1951_s19  ;;  %s345_s19 = scalar_lea.vmem [#allocation12], %s1390_s14 }
 0x453   : > { %994 = vperm.xlu1 %1691, %v1721_v12   ;;  %v1512_v40 = vpop.f32.mrf.mxu1  ;;  %s1250_s5 = sshll.u32 %s345_s19, 4  ;;  %s2388_s5 = int_to_ptr.vmem [resolvable:$true] %s1250_s5 }
 0x454   : > { %s1808_s24 = scalar_lea.vmem %s2388_s5, 128  ;;  %p1815_p12 = scmp.lt.s32.totalorder %s2388_s5, %s1813_s8 }
 0x455   : > { %v906_v41 = vpop.f32.mrf.mxu1  ;;  %p1809_p1 = scmp.ne.s32.totalorder %s2388_s5, %s1808_s24  ;;  %p1816_p0 = scmp.lt.s32.totalorder %s1814_s2, %s1808_s24 }
 0x457   : > { %1692 = vset.pattern.permute.xlu1 %v1945_v38  ;;  %v1513_v43 = vpop.f32.mrf.mxu1  ;;  %v1703_v38 = vld [vmem:[%s2489_s10 + $0x10] sm:$0xff]   ;;  %p1810_p3 = pnand %p1809_p1, %p2060_p7  ;;  %p1817_p2 = por %p1816_p0, %p1815_p12 }
 0x458   : > { %1129 = vperm.xlu1 %1692, %v1125_v42   ;;  %1537 = vmatpush3.bf16.msra.mxu1 %v1703_v38 }
 0x459   : > { %v1041_v44 = vpop.f32.mrf.mxu1  ;;  %1538 = vmatprep.subr.bf16.mxu1 %v1939_v0  ;;  %p1811_p5 = pneg %p1810_p3 }
 0x45a   : > { %1048 = vrot.lane.b32.xlu0 %v1041_v44, %s1950_s20  ;;  %s1419_s20 = sshll.u32 %s1246_s16, 7 }
 0x45b   : > { %v1524_v45 = vpop.f32.mrf.mxu1  ;;  %s2386_s15 = scalar_lea.hbm %s2492_s12, %s1419_s20  ;;  %p1818_p4 = pnand %p1817_p2, %p1811_p5 }
 0x45c   : > { %1693 = vset.pattern.permute.xlu1 %v1947_v3  ;;  %v1704_v3 = vld [vmem:[%s2489_s10 + $0x8] sm:$0xff]  }
 0x45d   : > { %v1044_v46 = vpop.f32.mrf.mxu1  ;;  %1143 = vperm.xlu1 %1693, %v1125_v42   ;;  %1539 = vmatpush3.bf16.msra.mxu1 %v1704_v3 }
 0x45e   : > { %1136 = vperm.xlu0 %1686, %v1125_v42   ;;  %1540 = vmatprep.subr.bf16.mxu1 %v1939_v0 }
 0x45f   : > { %v1525_v47 = vpop.f32.mrf.mxu1 }
 0x462   : > { %1694 = vset.pattern.permute.xlu0 %v1949_v16  ;;  %v1705_v16 = vld [vmem:[%s2489_s10] sm:$0xff]  }
 0x463   : > { %1150 = vperm.xlu0 %1694, %v1125_v42   ;;  %1541 = vmatpush3.bf16.msra.mxu1 %v1705_v16 }
 0x4bc   : > { %v773_v52 = vpop.permute.xlu1 %772 }
 0x4bd   : > { %v775_v53 = vadd.f32 %v773_v52, %v721_v51 }
 0x4bf   : > { %777 = vst.msk [vmem:[#allocation5] sm:$0xff] %vm776_vm12, %v775_v53 }
 0x4c4   : > { %v911_v57 = vpop.permute.xlu0 %910 }
 0x4c6   : > { %v853_v55 = vld [vmem:[#allocation5] sm:$0xff] }
 0x4c9   : > { %v857_v54 = vpop.permute.xlu1 %856 }
 0x4ca   : > { %v859_v56 = vmul.f32 %v857_v54, %v853_v55 }
 0x4cc   : > { %v913_v58 = vadd.f32 %v911_v57, %v859_v56  ;;  %v1049_v61 = vpop.permute.xlu0 %1048 }
 0x4ce   : > { %915 = vst.msk [vmem:[#allocation5] sm:$0xff] %vm914_vm13, %v913_v58  ;;  %v995_v59 = vpop.permute.xlu1 %994 }
 0x4d3   : > { %v1130_v1 = vpop.permute.xlu1 %1129 }
 0x4d5   : > { %v991_v60 = vld [vmem:[#allocation5] sm:$0xff] }
 0x4d6   : > { %v997_v0 = vmul.f32 %v995_v59, %v991_v60 }
 0x4d8   : > { %v1051_v62 = vadd.f32 %v1049_v61, %v997_v0  ;;  %v1144_v7 = vpop.permute.xlu1 %1143 }
 0x4d9   : > { %v1137_v4 = vpop.permute.xlu0 %1136 }
 0x4da   : > { %1053 = vst.msk [vmem:[#allocation5] sm:$0xff] %vm1052_vm14, %v1051_v62 }
 0x4de   : > { %v1151_v11 = vpop.permute.xlu0 %1150 }
 0x4e1   : > { %v1126_v63 = vld [vmem:[#allocation5] sm:$0xff] }
 0x4e2   : > { %v1132_v2 = vmul.f32 %v1130_v1, %v1126_v63 }
 0x4e4   : > { %1133 = vst.msk [vmem:[#allocation5] sm:$0xff] %vm504_vm3, %v1132_v2 }
 0x4eb   : > { %v1134_v5 = vld [vmem:[#allocation5] sm:$0xff] }
 0x4ec   : > { %v1139_v6 = vmul.f32 %v1137_v4, %v1134_v5 }
 0x4ee   : > { %1140 = vst.msk [vmem:[#allocation5] sm:$0xff] %vm776_vm12, %v1139_v6 }
 0x4f5   : > { %v1141_v8 = vld [vmem:[#allocation5] sm:$0xff] }
 0x4f6   : > { %v1146_v9 = vmul.f32 %v1144_v7, %v1141_v8 }
 0x4f8   : > { %1147 = vst.msk [vmem:[#allocation5] sm:$0xff] %vm914_vm13, %v1146_v9 }
 0x4ff   : > { %v1148_v13 = vld [vmem:[#allocation5] sm:$0xff] }
 0x500   : > { %v1153_v18 = vmul.f32 %v1151_v11, %v1148_v13 }
 0x502   : > { %1154 = vst.msk [vmem:[#allocation5] sm:$0xff] %vm1052_vm14, %v1153_v18 }
 0x509   : > { %v1155_v21 = vld [vmem:[#allocation5] sm:$0xff] }
 0x50a   : > { %v1156_v12 = vpack.c.bf16 %v1155_v21, %v1155_v21 }
 0x50c   : > { %1543 = vmatmul.mubr.msk.bf16.vlgmr.msra.gmra.mxu1 %vm426_vm11, %v1156_v12 }
 0x5cc   : > { %v1227_v14 = vpop.f32.mrf.mxu1 }
 0x5cd   : > { %1233 = vst.msk [vmem:[%s345_s19] sm:$0xff] %vm376_vm1, %v1227_v14 }
 0x5ce   : > { %v1544_v15 = vpop.f32.mrf.mxu1 }
 0x5cf   : > { %1821 = shalt.err (!%p1818_p4)
}
 0x5d0   : > { %s1822_s3 = scalar_lea.hbm %s2386_s15, 128  ;;  %s1826_s18 = scalar_lea.hbm %s2492_s12, 2048 }
 0x5d1   : > { %p1823_p13 = scmp.ne.s32.totalorder %s2386_s15, %s1822_s3  ;;  %p1827_p6 = scmp.lt.s32.totalorder %s2386_s15, %s2492_s12 }
 0x5d2   : > { %p1828_p9 = scmp.lt.s32.totalorder %s1826_s18, %s1822_s3 }
 0x5d3   : > { %p1824_p8 = pnand %p1823_p13, %p2060_p7 }
 0x5d4   : > { %p1829_p11 = por %p1828_p9, %p1827_p6 }
 0x5d5   : > { %p1825_p10 = pneg %p1824_p8 }
 0x5d7   : > { %p1830_p1 = pnand %p1829_p11, %p1825_p10 }
 0x5d9   : > { %1833 = shalt.err (!%p1830_p1)
}
 0x5da   : > { %1556 = dma.vmem_to_hbm [thread:$0]  (%p2060_p7), %s2388_s5, 128, %s2386_s15, %s1235_s28   ;;  %v1230_v22 = vpop.f32.mrf.mxu1 }
 0x5dc   : > { %v1545_v23 = vpop.f32.mrf.mxu1 }
 0x5dd PF: > { %s2493_s20 = sld [smem:[#allocation16_spill]]  ;;  %p1578_p3 = scmp.ge.s32.totalorder %s1932_s7, 2 }
 0x5de   : > { %s2494_s19 = sld [smem:[#allocation20_spill]] }
 0x5e3   : > { %s1262_s21 = sand.u32 1, %s2493_s20  }
 0x5e4   : > { %p2495_p5 = scmp.ne.s32.totalorder %s2494_s19, 0  ;;  %s1263_s22 = scalar_lea.sflag [#allocation8], %s1262_s21 }
 0x5e6   : > { %p1570_p12 = pnand %p1578_p3, %p2495_p5 }
 0x5e8   : > { %p1571_p0 = pneg %p1570_p12 }
 0x5ea   : > { %1887 = dma.done.wait (%p1571_p0), %s1263_s22, 128  }
 0x5eb   : > { %1889 = vsyncadd (%p1571_p0), %s1263_s22, 4294967168  ;;  %s23_s7 = sadd.s32 1, %s1932_s7   ;;  %s2496_s21 = sld [smem:[#allocation17_spill]] }
 0x5ec   : > { %p20_p2 = scmp.ge.s32.totalorder %s23_s7, 18   ;;  %s2497_s27 = sld [smem:[#allocation18_spill]] }
 0x5ed   : > { %s2498_s11 = sld [smem:[#allocation21_spill]]  ;;  %s2499_s22 = smov %s1900_s23 }
 0x5ee   : > { %s2500_s23 = smov %s2137_s29  ;;  %s2501_s24 = smov %s1908_s25 }
 0x5ef   : > { %s2502_s25 = smov %s1912_s26  ;;  %s2503_s26 = smov %s2132_s6 }
 0x5f0   : > { %s2504_s28 = smov %s1928_s30  ;;  %s2506_s30 = smov %s2512_s17 }
 0x5f1   :  { %22 = sbr.rel (!%p20_p2) target bundleno = 15 (0xf), region = 109 }
 0x5f3   : > { %s2505_s29 = smov %s2498_s11 }
 0x5f6   :  { %1268 = vsyncpa [#allocation7], 1 }
 0x5f7   :  { %1270 = vsyncpa [#allocation7 + $0x1], 1 }
 0x5f8   :  { %1271 = vsyncpa [#allocation10], 1 }
 0x5f9   :  { %1272 = vsyncpa [#allocation8], 1 }
 0x5fa   :  { %1274 = vsyncpa [#allocation8 + $0x1], 1 }

</bundles_post_ra>
